<compile_context>
chip_gen: v5e
topology: v5e:2x2
jax: 0.10.0
libtpu: 0.0.40
codegen_flags: <defaults>
</compile_context>

<pallas_src>
import functools

import jax
import jax.numpy as jnp
from jax.experimental import pallas as pl
from jax.experimental.pallas import tpu as pltpu


# ----------------------------------------------------------------------------
# Plain-JAX pieces (sequential / data-dependent, not suited to a Pallas kernel)
# ----------------------------------------------------------------------------
def farthest_point_sample_jax(xyz, npoint):
    """xyz: (B,N,3) -> (B,npoint) int32 indices.

    # TODO(synk): torch.randint initial centroid replaced by a deterministic
    # start index 0; FPS is a sequential data-dependent loop, kept in plain JAX.
    """
    B, N, _ = xyz.shape

    def body(i, state):
        centroids, distance, farthest = state
        centroids = centroids.at[:, i].set(farthest)
        centroid = jax.vmap(lambda p, j: p[j])(xyz, farthest)[:, None, :]  # (B,1,3)
        dist = jnp.sum((xyz - centroid) ** 2, axis=-1)                     # (B,N)
        distance = jnp.minimum(distance, dist)
        farthest = jnp.argmax(distance, axis=-1).astype(jnp.int32)
        return centroids, distance, farthest

    centroids0 = jnp.zeros((B, npoint), dtype=jnp.int32)
    distance0 = jnp.full((B, N), 1e10, dtype=jnp.float32)
    farthest0 = jnp.zeros((B,), dtype=jnp.int32)
    centroids, _, _ = jax.lax.fori_loop(
        0, npoint, body, (centroids0, distance0, farthest0))
    return centroids


def index_points_jax(points, idx):
    """points: (B,N,C), idx: (B,...) -> (B,...,C)."""
    return jax.vmap(lambda p, i: p[i])(points, idx)


# ----------------------------------------------------------------------------
# Fused Pallas kernel: kNN + gather + anchor-normalize + affine + concat
# ----------------------------------------------------------------------------
def local_grouper_kernel(feat_ref, anchor_ref, nxyz_ref, xyzt_ref, sqx_ref,
                         sqa_ref, alpha_ref, beta_ref, o_ref, *, kneighbors):
    N = feat_ref.shape[1]
    Cg = feat_ref.shape[2]
    S = anchor_ref.shape[1]
    D = Cg - 3
    K = kneighbors
    Cf = Cg + D

    feat = feat_ref[0]        # (N, Cg)   [points | xyz], pre-concatenated in wrapper
    anchor = anchor_ref[0]    # (S, Cg)   [new_points | new_xyz]
    nxyz = nxyz_ref[0]        # (S, 3)
    xyzt = xyzt_ref[0]        # (3, N)    lane-dense coords for the distance matmul
    sqx = sqx_ref[0]          # (1, N)    ||xyz||^2
    sqa = sqa_ref[0]          # (S, 1)    ||new_xyz||^2

    # --- kNN squared distances: one tiny MXU matmul (contraction dim = 3) ----
    d = sqa + sqx - 2.0 * jax.lax.dot_general(
        nxyz, xyzt, (((1,), (0,)), ((), ())),
        precision=jax.lax.Precision.HIGHEST,
        preferred_element_type=jnp.float32)                              # (S, N)

    # --- pack (distance, index) into one monotone key -> 1 reduction per k ---
    # d >= 0 (true squared distance); +1.0 keeps every key a normal float so the
    # bit-pattern <-> value ordering is strictly monotone (no denormal/FTZ risk).
    # The low log2(n_pow2) mantissa bits carry the neighbor index, i.e. distances
    # equal to within ~2^-(23-log2(N)) relative are treated as ties (lowest index
    # wins) -- effectively exact at these shapes.
    n_pow2 = pl.next_power_of_2(N)
    idx_bits = n_pow2 - 1
    d_key = jnp.maximum(d, 0.0) + 1.0
    d_int = pltpu.bitcast(d_key, jnp.int32)
    iota = jax.lax.broadcasted_iota(jnp.int32, (S, N), 1)
    key_int = jnp.bitwise_or(jnp.bitwise_and(d_int, jnp.int32(~idx_bits)), iota)
    key = pltpu.bitcast(key_int, jnp.float32)                            # (S, N)
    big = jnp.float32(3.0e38)

    # --- serial K-step selection: ONE cross-lane min per step, no matmuls ----
    sel_list = []
    for _ in range(K):
        kmin = jnp.min(key, axis=-1, keepdims=True)                      # (S, 1)
        sel = jnp.bitwise_and(pltpu.bitcast(kmin, jnp.int32),
                              jnp.int32(idx_bits))                       # (S, 1)
        sel_list.append(sel)
        key = jnp.where(iota == sel, big, key)        # exclude chosen neighbor

    # --- ONE stacked one-hot gather matmul for all K*S selections ------------
    sels = jnp.concatenate(sel_list, axis=0)                             # (K*S, 1)
    row_iota = jax.lax.broadcasted_iota(jnp.int32, (K * S, N), 1)
    onehot = (row_iota == sels).astype(jnp.float32)                      # (K*S, N)
    g = jax.lax.dot_general(onehot, feat, (((1,), (0,)), ((), ())),
                            precision=jax.lax.Precision.HIGHEST,         # exact f32 select
                            preferred_element_type=jnp.float32)          # (K*S, Cg)

    anchor_rep = jnp.concatenate([anchor] * K, axis=0)                   # (K*S, Cg)
    diff = g - anchor_rep                                                # (K*S, Cg)

    # --- per-batch unbiased std, fused via sum / sum-of-squares --------------
    n_elems = jnp.float32(K * S * Cg)
    s1 = jnp.sum(diff)
    s2 = jnp.sum(diff * diff)
    mu = s1 / n_elems
    ssq = jnp.maximum(s2 - n_elems * mu * mu, 0.0)
    inv = 1.0 / (jnp.sqrt(ssq / (n_elems - 1.0)) + 1e-5)

    # --- normalize + affine + interleave repeated anchor features ------------
    scale_b = jnp.broadcast_to(alpha_ref[...] * inv, (S, Cg))   # hoisted broadcasts
    beta_b = jnp.broadcast_to(beta_ref[...], (S, Cg))
    npts = anchor[:, :D]                                        # (S, D) anchor features
    for k in range(K):
        dk = diff[k * S:(k + 1) * S, :]                         # (S, Cg)
        o_ref[0, :, k * Cf:k * Cf + Cg] = dk * scale_b + beta_b
        o_ref[0, :, k * Cf + Cg:(k + 1) * Cf] = npts


def local_grouper_forward(xyz, points, new_xyz, new_points, alpha, beta,
                          kneighbors):
    """xyz:(B,N,3) points:(B,N,D) new_xyz:(B,S,3) new_points:(B,S,D).

    Returns (new_xyz (B,S,3), new_points_out (B,S,K,2D+3)).
    """
    B, N, _ = xyz.shape
    S = new_xyz.shape[1]
    D = points.shape[2]
    K = kneighbors
    Cg = D + 3
    Cf = Cg + D

    xyz = xyz.astype(jnp.float32)
    points = points.astype(jnp.float32)
    new_xyz = new_xyz.astype(jnp.float32)
    new_points = new_points.astype(jnp.float32)

    # Pre-concatenate / pre-transpose once in XLA so the kernel never relayouts
    # 3-wide tensors and the distance-matmul RHS is lane-dense.
    feat = jnp.concatenate([points, xyz], axis=-1)                # (B, N, Cg)
    anchor = jnp.concatenate([new_points, new_xyz], axis=-1)      # (B, S, Cg)
    xyz_t = jnp.transpose(xyz, (0, 2, 1))                         # (B, 3, N)
    sqx = jnp.sum(xyz * xyz, axis=-1)[:, None, :]                 # (B, 1, N)
    sqa = jnp.sum(new_xyz * new_xyz, axis=-1)[..., None]          # (B, S, 1)
    alpha2 = jnp.reshape(alpha, (1, Cg)).astype(jnp.float32)
    beta2 = jnp.reshape(beta, (1, Cg)).astype(jnp.float32)

    out = pl.pallas_call(
        functools.partial(local_grouper_kernel, kneighbors=K),
        out_shape=jax.ShapeDtypeStruct((B, S, K * Cf), jnp.float32),
        grid_spec=pltpu.PrefetchScalarGridSpec(
            num_scalar_prefetch=0,
            grid=(B,),
            in_specs=[
                pl.BlockSpec((1, N, Cg), lambda b: (b, 0, 0)),    # [points|xyz]
                pl.BlockSpec((1, S, Cg), lambda b: (b, 0, 0)),    # anchor
                pl.BlockSpec((1, S, 3), lambda b: (b, 0, 0)),     # new_xyz
                pl.BlockSpec((1, 3, N), lambda b: (b, 0, 0)),     # xyz^T (lane-dense)
                pl.BlockSpec((1, 1, N), lambda b: (b, 0, 0)),     # ||xyz||^2
                pl.BlockSpec((1, S, 1), lambda b: (b, 0, 0)),     # ||new_xyz||^2
                pl.BlockSpec((1, Cg), lambda b: (0, 0)),          # affine_alpha
                pl.BlockSpec((1, Cg), lambda b: (0, 0)),          # affine_beta
            ],
            out_specs=pl.BlockSpec((1, S, K * Cf), lambda b: (b, 0, 0)),
        ),
        compiler_params=pltpu.CompilerParams(
            dimension_semantics=("parallel",),
            vmem_limit_bytes=32 * 1024 * 1024),
    )(feat, anchor, new_xyz, xyz_t, sqx, sqa, alpha2, beta2)

    return new_xyz, out.reshape(B, S, K, Cf)   # free row-major reshape


# ----------------------------------------------------------------------------
# Pure-JAX reference (same eval semantics) for validation
# ----------------------------------------------------------------------------
def local_grouper_ref(xyz, points, fps_idx, kneighbors, alpha, beta):
    B, N, _ = xyz.shape
    D = points.shape[-1]
    S = fps_idx.shape[1]
    K = kneighbors

    new_xyz = index_points_jax(xyz, fps_idx)        # (B,S,3)
    new_points = index_points_jax(points, fps_idx)  # (B,S,D)

    d = (jnp.sum(new_xyz ** 2, -1)[..., None]
         + jnp.sum(xyz ** 2, -1)[:, None, :]
         - 2.0 * jnp.einsum('bsc,bnc->bsn', new_xyz, xyz,
                            precision=jax.lax.Precision.HIGHEST))
    idx = jax.lax.top_k(-d, K)[1]                   # (B,S,K), ascending distance

    grouped_xyz = index_points_jax(xyz, idx)        # (B,S,K,3)
    grouped_pts = index_points_jax(points, idx)     # (B,S,K,D)
    grouped = jnp.concatenate([grouped_pts, grouped_xyz], -1)          # (B,S,K,D+3)
    mean = jnp.concatenate([new_points, new_xyz], -1)[:, :, None, :]   # anchor
    diff = grouped - mean
    std = jnp.std(diff.reshape(B, -1), axis=-1, ddof=1)[:, None, None, None]
    gp = (alpha.reshape(1, 1, 1, -1) * (diff / (std + 1e-5))
          + beta.reshape(1, 1, 1, -1))
    rep = jnp.broadcast_to(new_points[:, :, None, :], (B, S, K, D))
    return new_xyz, jnp.concatenate([gp, rep], -1)


if __name__ == "__main__":
    # Small shapes consistent with the module.  B=4 so the parallel batch grid
    # keeps both TensorCores busy on v7x.
    B, N, D = 4, 64, 16      # batch, points, feature channels
    S, K = 16, 8             # groups (anchors), k-neighbors

    key = jax.random.PRNGKey(0)
    k1, k2, k3, k4 = jax.random.split(key, 4)
    xyz = jax.random.normal(k1, (B, N, 3), dtype=jnp.float32)
    points = jax.random.normal(k2, (B, N, D), dtype=jnp.float32)
    alpha = 1.0 + 0.1 * jax.random.normal(k3, (1, 1, 1, D + 3), dtype=jnp.float32)
    beta = 0.1 * jax.random.normal(k4, (1, 1, 1, D + 3), dtype=jnp.float32)

    # Sequential FPS + anchor gathers in plain JAX (shared by kernel & reference).
    fps_idx = farthest_point_sample_jax(xyz, S)
    new_xyz = index_points_jax(xyz, fps_idx)
    new_points = index_points_jax(points, fps_idx)

    out_xyz, out_points = local_grouper_forward(
        xyz, points, new_xyz, new_points, alpha, beta, K)
    out_points = jax.block_until_ready(out_points)

    ref_xyz, ref_points = local_grouper_ref(xyz, points, fps_idx, K, alpha, beta)

    assert out_xyz.shape == (B, S, 3)
    assert out_points.shape == (B, S, K, 2 * D + 3)
    assert jnp.allclose(out_xyz, ref_xyz)
    err = float(jnp.max(jnp.abs(out_points - ref_points)))
    assert err < 2e-4, err
    print("KERNEL_OK")
</pallas_src>

<mosaic_0001>
module attributes {stable_mosaic.version = 11 : i64} {
  func.func @local_grouper_kernel(%arg0: i32, %arg1: memref<1x64x19xf32, #tpu.memory_space<vmem>>, %arg2: memref<1x16x19xf32, #tpu.memory_space<vmem>>, %arg3: memref<1x16x3xf32, #tpu.memory_space<vmem>>, %arg4: memref<1x3x64xf32, #tpu.memory_space<vmem>>, %arg5: memref<1x1x64xf32, #tpu.memory_space<vmem>>, %arg6: memref<1x16x1xf32, #tpu.memory_space<vmem>>, %arg7: memref<1x19xf32, #tpu.memory_space<vmem>>, %arg8: memref<1x19xf32, #tpu.memory_space<vmem>>, %arg9: memref<1x16x280xf32, #tpu.memory_space<vmem>>) attributes {dimension_semantics = [#tpu.dimension_semantics<parallel>], iteration_bounds = array<i64: 4>, scalar_prefetch = 0 : i64, scratch_operands = 0 : i64, tpu.core_type = #tpu.core_type<tc>, window_params = [{transform_indices = @transform_0, window_bounds = array<i64: 1, 64, 19>}, {transform_indices = @transform_1, window_bounds = array<i64: 1, 16, 19>}, {transform_indices = @transform_2, window_bounds = array<i64: 1, 16, 3>}, {transform_indices = @transform_3, window_bounds = array<i64: 1, 3, 64>}, {transform_indices = @transform_4, window_bounds = array<i64: 1, 1, 64>}, {transform_indices = @transform_5, window_bounds = array<i64: 1, 16, 1>}, {pipeline_mode = #tpu.pipeline_mode<synchronous>, transform_indices = @transform_6, window_bounds = array<i64: 1, 19>}, {pipeline_mode = #tpu.pipeline_mode<synchronous>, transform_indices = @transform_7, window_bounds = array<i64: 1, 19>}, {transform_indices = @transform_8, window_bounds = array<i64: 1, 16, 280>}]} {
    %c0 = arith.constant 0 : index
    %c0_0 = arith.constant 0 : index
    %c0_1 = arith.constant 0 : index
    %0 = vector.load %arg1[%c0, %c0_0, %c0_1] : memref<1x64x19xf32, #tpu.memory_space<vmem>>, vector<1x64x19xf32>
    %1 = vector.shape_cast %0 : vector<1x64x19xf32> to vector<64x19xf32>
    %c0_2 = arith.constant 0 : index
    %c0_3 = arith.constant 0 : index
    %c0_4 = arith.constant 0 : index
    %2 = vector.load %arg2[%c0_2, %c0_3, %c0_4] : memref<1x16x19xf32, #tpu.memory_space<vmem>>, vector<1x16x19xf32>
    %3 = vector.shape_cast %2 : vector<1x16x19xf32> to vector<16x19xf32>
    %c0_5 = arith.constant 0 : index
    %c0_6 = arith.constant 0 : index
    %c0_7 = arith.constant 0 : index
    %4 = vector.load %arg3[%c0_5, %c0_6, %c0_7] : memref<1x16x3xf32, #tpu.memory_space<vmem>>, vector<1x16x3xf32>
    %5 = vector.shape_cast %4 : vector<1x16x3xf32> to vector<16x3xf32>
    %c0_8 = arith.constant 0 : index
    %c0_9 = arith.constant 0 : index
    %c0_10 = arith.constant 0 : index
    %6 = vector.load %arg4[%c0_8, %c0_9, %c0_10] : memref<1x3x64xf32, #tpu.memory_space<vmem>>, vector<1x3x64xf32>
    %7 = vector.shape_cast %6 : vector<1x3x64xf32> to vector<3x64xf32>
    %c0_11 = arith.constant 0 : index
    %c0_12 = arith.constant 0 : index
    %c0_13 = arith.constant 0 : index
    %8 = vector.load %arg5[%c0_11, %c0_12, %c0_13] : memref<1x1x64xf32, #tpu.memory_space<vmem>>, vector<1x1x64xf32>
    %9 = vector.shape_cast %8 : vector<1x1x64xf32> to vector<1x64xf32>
    %c0_14 = arith.constant 0 : index
    %c0_15 = arith.constant 0 : index
    %c0_16 = arith.constant 0 : index
    %10 = vector.load %arg6[%c0_14, %c0_15, %c0_16] : memref<1x16x1xf32, #tpu.memory_space<vmem>>, vector<1x16x1xf32>
    %11 = vector.shape_cast %10 : vector<1x16x1xf32> to vector<16x1xf32>
    %12 = vector.broadcast %11 : vector<16x1xf32> to vector<16x64xf32>
    %13 = vector.broadcast %9 : vector<1x64xf32> to vector<16x64xf32>
    %14 = arith.addf %12, %13 : vector<16x64xf32>
    %cst = arith.constant dense<0.000000e+00> : vector<16x64xf32>
    %15 = tpu.matmul %5, %7, %cst {dimension_numbers = #tpu.dot_dimension_numbers<[1], [0], [0], [1], [0, 0, 1, 1], [], []>, precision = #tpu.contract_precision<fp32>} : vector<16x3xf32>, vector<3x64xf32>, vector<16x64xf32> -> vector<16x64xf32>
    %cst_17 = arith.constant 2.000000e+00 : f32
    %16 = vector.broadcast %cst_17 : f32 to vector<16x64xf32>
    %17 = arith.mulf %16, %15 : vector<16x64xf32>
    %18 = arith.subf %14, %17 : vector<16x64xf32>
    %cst_18 = arith.constant 0.000000e+00 : f32
    %19 = vector.broadcast %cst_18 : f32 to vector<16x64xf32>
    %20 = arith.maximumf %18, %19 : vector<16x64xf32>
    %cst_19 = arith.constant 1.000000e+00 : f32
    %21 = vector.broadcast %cst_19 : f32 to vector<16x64xf32>
    %22 = arith.addf %20, %21 : vector<16x64xf32>
    %23 = tpu.bitcast %22 : vector<16x64xf32> -> vector<16x64xi32>
    %24 = tpu.iota {dimensions = array<i32: 1>} : vector<16x64xi32>
    %c-64_i32 = arith.constant -64 : i32
    %25 = vector.broadcast %c-64_i32 : i32 to vector<16x64xi32>
    %26 = arith.andi %23, %25 : vector<16x64xi32>
    %27 = arith.ori %26, %24 : vector<16x64xi32>
    %28 = tpu.bitcast %27 : vector<16x64xi32> -> vector<16x64xf32>
    %cst_20 = arith.constant dense<0x7F800000> : vector<16xf32>
    %29 = vector.multi_reduction <minimumf>, %28, %cst_20 [1] : vector<16x64xf32> to vector<16xf32>
    %30 = vector.shape_cast %29 : vector<16xf32> to vector<16x1xf32>
    %31 = tpu.bitcast %30 : vector<16x1xf32> -> vector<16x1xi32>
    %c63_i32 = arith.constant 63 : i32
    %32 = vector.broadcast %c63_i32 : i32 to vector<16x1xi32>
    %33 = arith.andi %31, %32 : vector<16x1xi32>
    %34 = vector.broadcast %33 : vector<16x1xi32> to vector<16x64xi32>
    %35 = arith.cmpi eq, %24, %34 : vector<16x64xi32>
    %cst_21 = arith.constant 3.000000e+38 : f32
    %36 = vector.broadcast %cst_21 : f32 to vector<16x64xf32>
    %37 = arith.select %35, %36, %28 : vector<16x64xi1>, vector<16x64xf32>
    %cst_22 = arith.constant dense<0x7F800000> : vector<16xf32>
    %38 = vector.multi_reduction <minimumf>, %37, %cst_22 [1] : vector<16x64xf32> to vector<16xf32>
    %39 = vector.shape_cast %38 : vector<16xf32> to vector<16x1xf32>
    %40 = tpu.bitcast %39 : vector<16x1xf32> -> vector<16x1xi32>
    %c63_i32_23 = arith.constant 63 : i32
    %41 = vector.broadcast %c63_i32_23 : i32 to vector<16x1xi32>
    %42 = arith.andi %40, %41 : vector<16x1xi32>
    %43 = vector.broadcast %42 : vector<16x1xi32> to vector<16x64xi32>
    %44 = arith.cmpi eq, %24, %43 : vector<16x64xi32>
    %cst_24 = arith.constant 3.000000e+38 : f32
    %45 = vector.broadcast %cst_24 : f32 to vector<16x64xf32>
    %46 = arith.select %44, %45, %37 : vector<16x64xi1>, vector<16x64xf32>
    %cst_25 = arith.constant dense<0x7F800000> : vector<16xf32>
    %47 = vector.multi_reduction <minimumf>, %46, %cst_25 [1] : vector<16x64xf32> to vector<16xf32>
    %48 = vector.shape_cast %47 : vector<16xf32> to vector<16x1xf32>
    %49 = tpu.bitcast %48 : vector<16x1xf32> -> vector<16x1xi32>
    %c63_i32_26 = arith.constant 63 : i32
    %50 = vector.broadcast %c63_i32_26 : i32 to vector<16x1xi32>
    %51 = arith.andi %49, %50 : vector<16x1xi32>
    %52 = vector.broadcast %51 : vector<16x1xi32> to vector<16x64xi32>
    %53 = arith.cmpi eq, %24, %52 : vector<16x64xi32>
    %cst_27 = arith.constant 3.000000e+38 : f32
    %54 = vector.broadcast %cst_27 : f32 to vector<16x64xf32>
    %55 = arith.select %53, %54, %46 : vector<16x64xi1>, vector<16x64xf32>
    %cst_28 = arith.constant dense<0x7F800000> : vector<16xf32>
    %56 = vector.multi_reduction <minimumf>, %55, %cst_28 [1] : vector<16x64xf32> to vector<16xf32>
    %57 = vector.shape_cast %56 : vector<16xf32> to vector<16x1xf32>
    %58 = tpu.bitcast %57 : vector<16x1xf32> -> vector<16x1xi32>
    %c63_i32_29 = arith.constant 63 : i32
    %59 = vector.broadcast %c63_i32_29 : i32 to vector<16x1xi32>
    %60 = arith.andi %58, %59 : vector<16x1xi32>
    %61 = vector.broadcast %60 : vector<16x1xi32> to vector<16x64xi32>
    %62 = arith.cmpi eq, %24, %61 : vector<16x64xi32>
    %cst_30 = arith.constant 3.000000e+38 : f32
    %63 = vector.broadcast %cst_30 : f32 to vector<16x64xf32>
    %64 = arith.select %62, %63, %55 : vector<16x64xi1>, vector<16x64xf32>
    %cst_31 = arith.constant dense<0x7F800000> : vector<16xf32>
    %65 = vector.multi_reduction <minimumf>, %64, %cst_31 [1] : vector<16x64xf32> to vector<16xf32>
    %66 = vector.shape_cast %65 : vector<16xf32> to vector<16x1xf32>
    %67 = tpu.bitcast %66 : vector<16x1xf32> -> vector<16x1xi32>
    %c63_i32_32 = arith.constant 63 : i32
    %68 = vector.broadcast %c63_i32_32 : i32 to vector<16x1xi32>
    %69 = arith.andi %67, %68 : vector<16x1xi32>
    %70 = vector.broadcast %69 : vector<16x1xi32> to vector<16x64xi32>
    %71 = arith.cmpi eq, %24, %70 : vector<16x64xi32>
    %cst_33 = arith.constant 3.000000e+38 : f32
    %72 = vector.broadcast %cst_33 : f32 to vector<16x64xf32>
    %73 = arith.select %71, %72, %64 : vector<16x64xi1>, vector<16x64xf32>
    %cst_34 = arith.constant dense<0x7F800000> : vector<16xf32>
    %74 = vector.multi_reduction <minimumf>, %73, %cst_34 [1] : vector<16x64xf32> to vector<16xf32>
    %75 = vector.shape_cast %74 : vector<16xf32> to vector<16x1xf32>
    %76 = tpu.bitcast %75 : vector<16x1xf32> -> vector<16x1xi32>
    %c63_i32_35 = arith.constant 63 : i32
    %77 = vector.broadcast %c63_i32_35 : i32 to vector<16x1xi32>
    %78 = arith.andi %76, %77 : vector<16x1xi32>
    %79 = vector.broadcast %78 : vector<16x1xi32> to vector<16x64xi32>
    %80 = arith.cmpi eq, %24, %79 : vector<16x64xi32>
    %cst_36 = arith.constant 3.000000e+38 : f32
    %81 = vector.broadcast %cst_36 : f32 to vector<16x64xf32>
    %82 = arith.select %80, %81, %73 : vector<16x64xi1>, vector<16x64xf32>
    %cst_37 = arith.constant dense<0x7F800000> : vector<16xf32>
    %83 = vector.multi_reduction <minimumf>, %82, %cst_37 [1] : vector<16x64xf32> to vector<16xf32>
    %84 = vector.shape_cast %83 : vector<16xf32> to vector<16x1xf32>
    %85 = tpu.bitcast %84 : vector<16x1xf32> -> vector<16x1xi32>
    %c63_i32_38 = arith.constant 63 : i32
    %86 = vector.broadcast %c63_i32_38 : i32 to vector<16x1xi32>
    %87 = arith.andi %85, %86 : vector<16x1xi32>
    %88 = vector.broadcast %87 : vector<16x1xi32> to vector<16x64xi32>
    %89 = arith.cmpi eq, %24, %88 : vector<16x64xi32>
    %cst_39 = arith.constant 3.000000e+38 : f32
    %90 = vector.broadcast %cst_39 : f32 to vector<16x64xf32>
    %91 = arith.select %89, %90, %82 : vector<16x64xi1>, vector<16x64xf32>
    %cst_40 = arith.constant dense<0x7F800000> : vector<16xf32>
    %92 = vector.multi_reduction <minimumf>, %91, %cst_40 [1] : vector<16x64xf32> to vector<16xf32>
    %93 = vector.shape_cast %92 : vector<16xf32> to vector<16x1xf32>
    %94 = tpu.bitcast %93 : vector<16x1xf32> -> vector<16x1xi32>
    %c63_i32_41 = arith.constant 63 : i32
    %95 = vector.broadcast %c63_i32_41 : i32 to vector<16x1xi32>
    %96 = arith.andi %94, %95 : vector<16x1xi32>
    %97 = tpu.concatenate %33, %42, %51, %60, %69, %78, %87, %96 in 0 : vector<16x1xi32>, vector<16x1xi32>, vector<16x1xi32>, vector<16x1xi32>, vector<16x1xi32>, vector<16x1xi32>, vector<16x1xi32>, vector<16x1xi32> -> vector<128x1xi32>
    %98 = tpu.iota {dimensions = array<i32: 1>} : vector<128x64xi32>
    %99 = vector.broadcast %97 : vector<128x1xi32> to vector<128x64xi32>
    %100 = arith.cmpi eq, %98, %99 : vector<128x64xi32>
    %101 = arith.extui %100 : vector<128x64xi1> to vector<128x64xi32>
    %102 = arith.sitofp %101 : vector<128x64xi32> to vector<128x64xf32>
    %cst_42 = arith.constant dense<0.000000e+00> : vector<128x19xf32>
    %103 = tpu.matmul %102, %1, %cst_42 {dimension_numbers = #tpu.dot_dimension_numbers<[1], [0], [0], [1], [0, 0, 1, 1], [], []>, precision = #tpu.contract_precision<fp32>} : vector<128x64xf32>, vector<64x19xf32>, vector<128x19xf32> -> vector<128x19xf32>
    %104 = tpu.concatenate %3, %3, %3, %3, %3, %3, %3, %3 in 0 : vector<16x19xf32>, vector<16x19xf32>, vector<16x19xf32>, vector<16x19xf32>, vector<16x19xf32>, vector<16x19xf32>, vector<16x19xf32>, vector<16x19xf32> -> vector<128x19xf32>
    %105 = arith.subf %103, %104 : vector<128x19xf32>
    %106 = vector.shape_cast %105 : vector<128x19xf32> to vector<1x128x19xf32>
    %cst_43 = arith.constant dense<0.000000e+00> : vector<1xf32>
    %107 = vector.multi_reduction <add>, %106, %cst_43 [1, 2] : vector<1x128x19xf32> to vector<1xf32>
    %108 = vector.shape_cast %107 : vector<1xf32> to vector<1x1x1xf32>
    %109 = vector.extract %108[0, 0, 0] : f32 from vector<1x1x1xf32>
    %110 = arith.mulf %105, %105 : vector<128x19xf32>
    %111 = vector.shape_cast %110 : vector<128x19xf32> to vector<1x128x19xf32>
    %cst_44 = arith.constant dense<0.000000e+00> : vector<1xf32>
    %112 = vector.multi_reduction <add>, %111, %cst_44 [1, 2] : vector<1x128x19xf32> to vector<1xf32>
    %113 = vector.shape_cast %112 : vector<1xf32> to vector<1x1x1xf32>
    %114 = vector.extract %113[0, 0, 0] : f32 from vector<1x1x1xf32>
    %cst_45 = arith.constant 2.432000e+03 : f32
    %115 = arith.divf %109, %cst_45 : f32
    %cst_46 = arith.constant 2.432000e+03 : f32
    %116 = arith.mulf %cst_46, %115 : f32
    %117 = arith.mulf %116, %115 : f32
    %118 = arith.subf %114, %117 : f32
    %cst_47 = arith.constant 0.000000e+00 : f32
    %119 = arith.maximumf %118, %cst_47 : f32
    %cst_48 = arith.constant 2.432000e+03 : f32
    %cst_49 = arith.constant 1.000000e+00 : f32
    %120 = arith.subf %cst_48, %cst_49 : f32
    %121 = arith.divf %119, %120 : f32
    %122 = math.sqrt %121 : f32
    %cst_50 = arith.constant 9.99999974E-6 : f32
    %123 = arith.addf %122, %cst_50 : f32
    %cst_51 = arith.constant 1.000000e+00 : f32
    %124 = arith.divf %cst_51, %123 : f32
    %c0_52 = arith.constant 0 : index
    %c0_53 = arith.constant 0 : index
    %125 = vector.load %arg7[%c0_52, %c0_53] : memref<1x19xf32, #tpu.memory_space<vmem>>, vector<1x19xf32>
    %126 = vector.broadcast %124 : f32 to vector<1x19xf32>
    %127 = arith.mulf %125, %126 : vector<1x19xf32>
    %128 = vector.shape_cast %127 : vector<1x19xf32> to vector<1x19xf32>
    %129 = vector.broadcast %128 : vector<1x19xf32> to vector<16x19xf32>
    %c0_54 = arith.constant 0 : index
    %c0_55 = arith.constant 0 : index
    %130 = vector.load %arg8[%c0_54, %c0_55] : memref<1x19xf32, #tpu.memory_space<vmem>>, vector<1x19xf32>
    %131 = vector.shape_cast %130 : vector<1x19xf32> to vector<1x19xf32>
    %132 = vector.broadcast %131 : vector<1x19xf32> to vector<16x19xf32>
    %133 = vector.extract_strided_slice %3 {offsets = [0, 0], sizes = [16, 16], strides = [1, 1]} : vector<16x19xf32> to vector<16x16xf32>
    %134 = vector.extract_strided_slice %105 {offsets = [0, 0], sizes = [16, 19], strides = [1, 1]} : vector<128x19xf32> to vector<16x19xf32>
    %135 = arith.mulf %134, %129 : vector<16x19xf32>
    %136 = arith.addf %135, %132 : vector<16x19xf32>
    %c0_56 = arith.constant 0 : index
    %c0_57 = arith.constant 0 : index
    %c0_58 = arith.constant 0 : index
    %137 = vector.load %arg9[%c0_56, %c0_57, %c0_58] : memref<1x16x280xf32, #tpu.memory_space<vmem>>, vector<1x16x19xf32>
    %138 = vector.shape_cast %137 : vector<1x16x19xf32> to vector<16x19xf32>
    %139 = vector.shape_cast %136 : vector<16x19xf32> to vector<1x16x19xf32>
    tpu.vector_store %arg9[%c0_56, %c0_57, %c0_58], %139 {strides = array<i32>} : memref<1x16x280xf32, #tpu.memory_space<vmem>>, vector<1x16x19xf32>,
    %c0_59 = arith.constant 0 : index
    %c0_60 = arith.constant 0 : index
    %c19 = arith.constant 19 : index
    %140 = vector.load %arg9[%c0_59, %c0_60, %c19] : memref<1x16x280xf32, #tpu.memory_space<vmem>>, vector<1x16x16xf32>
    %141 = vector.shape_cast %140 : vector<1x16x16xf32> to vector<16x16xf32>
    %142 = vector.shape_cast %133 : vector<16x16xf32> to vector<1x16x16xf32>
    tpu.vector_store %arg9[%c0_59, %c0_60, %c19], %142 {strides = array<i32>} : memref<1x16x280xf32, #tpu.memory_space<vmem>>, vector<1x16x16xf32>,
    %143 = vector.extract_strided_slice %105 {offsets = [16, 0], sizes = [16, 19], strides = [1, 1]} : vector<128x19xf32> to vector<16x19xf32>
    %144 = arith.mulf %143, %129 : vector<16x19xf32>
    %145 = arith.addf %144, %132 : vector<16x19xf32>
    %c0_61 = arith.constant 0 : index
    %c0_62 = arith.constant 0 : index
    %c35 = arith.constant 35 : index
    %146 = vector.load %arg9[%c0_61, %c0_62, %c35] : memref<1x16x280xf32, #tpu.memory_space<vmem>>, vector<1x16x19xf32>
    %147 = vector.shape_cast %146 : vector<1x16x19xf32> to vector<16x19xf32>
    %148 = vector.shape_cast %145 : vector<16x19xf32> to vector<1x16x19xf32>
    tpu.vector_store %arg9[%c0_61, %c0_62, %c35], %148 {strides = array<i32>} : memref<1x16x280xf32, #tpu.memory_space<vmem>>, vector<1x16x19xf32>,
    %c0_63 = arith.constant 0 : index
    %c0_64 = arith.constant 0 : index
    %c54 = arith.constant 54 : index
    %149 = vector.load %arg9[%c0_63, %c0_64, %c54] : memref<1x16x280xf32, #tpu.memory_space<vmem>>, vector<1x16x16xf32>
    %150 = vector.shape_cast %149 : vector<1x16x16xf32> to vector<16x16xf32>
    %151 = vector.shape_cast %133 : vector<16x16xf32> to vector<1x16x16xf32>
    tpu.vector_store %arg9[%c0_63, %c0_64, %c54], %151 {strides = array<i32>} : memref<1x16x280xf32, #tpu.memory_space<vmem>>, vector<1x16x16xf32>,
    %152 = vector.extract_strided_slice %105 {offsets = [32, 0], sizes = [16, 19], strides = [1, 1]} : vector<128x19xf32> to vector<16x19xf32>
    %153 = arith.mulf %152, %129 : vector<16x19xf32>
    %154 = arith.addf %153, %132 : vector<16x19xf32>
    %c0_65 = arith.constant 0 : index
    %c0_66 = arith.constant 0 : index
    %c70 = arith.constant 70 : index
    %155 = vector.load %arg9[%c0_65, %c0_66, %c70] : memref<1x16x280xf32, #tpu.memory_space<vmem>>, vector<1x16x19xf32>
    %156 = vector.shape_cast %155 : vector<1x16x19xf32> to vector<16x19xf32>
    %157 = vector.shape_cast %154 : vector<16x19xf32> to vector<1x16x19xf32>
    tpu.vector_store %arg9[%c0_65, %c0_66, %c70], %157 {strides = array<i32>} : memref<1x16x280xf32, #tpu.memory_space<vmem>>, vector<1x16x19xf32>,
    %c0_67 = arith.constant 0 : index
    %c0_68 = arith.constant 0 : index
    %c89 = arith.constant 89 : index
    %158 = vector.load %arg9[%c0_67, %c0_68, %c89] : memref<1x16x280xf32, #tpu.memory_space<vmem>>, vector<1x16x16xf32>
    %159 = vector.shape_cast %158 : vector<1x16x16xf32> to vector<16x16xf32>
    %160 = vector.shape_cast %133 : vector<16x16xf32> to vector<1x16x16xf32>
    tpu.vector_store %arg9[%c0_67, %c0_68, %c89], %160 {strides = array<i32>} : memref<1x16x280xf32, #tpu.memory_space<vmem>>, vector<1x16x16xf32>,
    %161 = vector.extract_strided_slice %105 {offsets = [48, 0], sizes = [16, 19], strides = [1, 1]} : vector<128x19xf32> to vector<16x19xf32>
    %162 = arith.mulf %161, %129 : vector<16x19xf32>
    %163 = arith.addf %162, %132 : vector<16x19xf32>
    %c0_69 = arith.constant 0 : index
    %c0_70 = arith.constant 0 : index
    %c105 = arith.constant 105 : index
    %164 = vector.load %arg9[%c0_69, %c0_70, %c105] : memref<1x16x280xf32, #tpu.memory_space<vmem>>, vector<1x16x19xf32>
    %165 = vector.shape_cast %164 : vector<1x16x19xf32> to vector<16x19xf32>
    %166 = vector.shape_cast %163 : vector<16x19xf32> to vector<1x16x19xf32>
    tpu.vector_store %arg9[%c0_69, %c0_70, %c105], %166 {strides = array<i32>} : memref<1x16x280xf32, #tpu.memory_space<vmem>>, vector<1x16x19xf32>,
    %c0_71 = arith.constant 0 : index
    %c0_72 = arith.constant 0 : index
    %c124 = arith.constant 124 : index
    %167 = vector.load %arg9[%c0_71, %c0_72, %c124] : memref<1x16x280xf32, #tpu.memory_space<vmem>>, vector<1x16x16xf32>
    %168 = vector.shape_cast %167 : vector<1x16x16xf32> to vector<16x16xf32>
    %169 = vector.shape_cast %133 : vector<16x16xf32> to vector<1x16x16xf32>
    tpu.vector_store %arg9[%c0_71, %c0_72, %c124], %169 {strides = array<i32>} : memref<1x16x280xf32, #tpu.memory_space<vmem>>, vector<1x16x16xf32>,
    %170 = vector.extract_strided_slice %105 {offsets = [64, 0], sizes = [16, 19], strides = [1, 1]} : vector<128x19xf32> to vector<16x19xf32>
    %171 = arith.mulf %170, %129 : vector<16x19xf32>
    %172 = arith.addf %171, %132 : vector<16x19xf32>
    %c0_73 = arith.constant 0 : index
    %c0_74 = arith.constant 0 : index
    %c140 = arith.constant 140 : index
    %173 = vector.load %arg9[%c0_73, %c0_74, %c140] : memref<1x16x280xf32, #tpu.memory_space<vmem>>, vector<1x16x19xf32>
    %174 = vector.shape_cast %173 : vector<1x16x19xf32> to vector<16x19xf32>
    %175 = vector.shape_cast %172 : vector<16x19xf32> to vector<1x16x19xf32>
    tpu.vector_store %arg9[%c0_73, %c0_74, %c140], %175 {strides = array<i32>} : memref<1x16x280xf32, #tpu.memory_space<vmem>>, vector<1x16x19xf32>,
    %c0_75 = arith.constant 0 : index
    %c0_76 = arith.constant 0 : index
    %c159 = arith.constant 159 : index
    %176 = vector.load %arg9[%c0_75, %c0_76, %c159] : memref<1x16x280xf32, #tpu.memory_space<vmem>>, vector<1x16x16xf32>
    %177 = vector.shape_cast %176 : vector<1x16x16xf32> to vector<16x16xf32>
    %178 = vector.shape_cast %133 : vector<16x16xf32> to vector<1x16x16xf32>
    tpu.vector_store %arg9[%c0_75, %c0_76, %c159], %178 {strides = array<i32>} : memref<1x16x280xf32, #tpu.memory_space<vmem>>, vector<1x16x16xf32>,
    %179 = vector.extract_strided_slice %105 {offsets = [80, 0], sizes = [16, 19], strides = [1, 1]} : vector<128x19xf32> to vector<16x19xf32>
    %180 = arith.mulf %179, %129 : vector<16x19xf32>
    %181 = arith.addf %180, %132 : vector<16x19xf32>
    %c0_77 = arith.constant 0 : index
    %c0_78 = arith.constant 0 : index
    %c175 = arith.constant 175 : index
    %182 = vector.load %arg9[%c0_77, %c0_78, %c175] : memref<1x16x280xf32, #tpu.memory_space<vmem>>, vector<1x16x19xf32>
    %183 = vector.shape_cast %182 : vector<1x16x19xf32> to vector<16x19xf32>
    %184 = vector.shape_cast %181 : vector<16x19xf32> to vector<1x16x19xf32>
    tpu.vector_store %arg9[%c0_77, %c0_78, %c175], %184 {strides = array<i32>} : memref<1x16x280xf32, #tpu.memory_space<vmem>>, vector<1x16x19xf32>,
    %c0_79 = arith.constant 0 : index
    %c0_80 = arith.constant 0 : index
    %c194 = arith.constant 194 : index
    %185 = vector.load %arg9[%c0_79, %c0_80, %c194] : memref<1x16x280xf32, #tpu.memory_space<vmem>>, vector<1x16x16xf32>
    %186 = vector.shape_cast %185 : vector<1x16x16xf32> to vector<16x16xf32>
    %187 = vector.shape_cast %133 : vector<16x16xf32> to vector<1x16x16xf32>
    tpu.vector_store %arg9[%c0_79, %c0_80, %c194], %187 {strides = array<i32>} : memref<1x16x280xf32, #tpu.memory_space<vmem>>, vector<1x16x16xf32>,
    %188 = vector.extract_strided_slice %105 {offsets = [96, 0], sizes = [16, 19], strides = [1, 1]} : vector<128x19xf32> to vector<16x19xf32>
    %189 = arith.mulf %188, %129 : vector<16x19xf32>
    %190 = arith.addf %189, %132 : vector<16x19xf32>
    %c0_81 = arith.constant 0 : index
    %c0_82 = arith.constant 0 : index
    %c210 = arith.constant 210 : index
    %191 = vector.load %arg9[%c0_81, %c0_82, %c210] : memref<1x16x280xf32, #tpu.memory_space<vmem>>, vector<1x16x19xf32>
    %192 = vector.shape_cast %191 : vector<1x16x19xf32> to vector<16x19xf32>
    %193 = vector.shape_cast %190 : vector<16x19xf32> to vector<1x16x19xf32>
    tpu.vector_store %arg9[%c0_81, %c0_82, %c210], %193 {strides = array<i32>} : memref<1x16x280xf32, #tpu.memory_space<vmem>>, vector<1x16x19xf32>,
    %c0_83 = arith.constant 0 : index
    %c0_84 = arith.constant 0 : index
    %c229 = arith.constant 229 : index
    %194 = vector.load %arg9[%c0_83, %c0_84, %c229] : memref<1x16x280xf32, #tpu.memory_space<vmem>>, vector<1x16x16xf32>
    %195 = vector.shape_cast %194 : vector<1x16x16xf32> to vector<16x16xf32>
    %196 = vector.shape_cast %133 : vector<16x16xf32> to vector<1x16x16xf32>
    tpu.vector_store %arg9[%c0_83, %c0_84, %c229], %196 {strides = array<i32>} : memref<1x16x280xf32, #tpu.memory_space<vmem>>, vector<1x16x16xf32>,
    %197 = vector.extract_strided_slice %105 {offsets = [112, 0], sizes = [16, 19], strides = [1, 1]} : vector<128x19xf32> to vector<16x19xf32>
    %198 = arith.mulf %197, %129 : vector<16x19xf32>
    %199 = arith.addf %198, %132 : vector<16x19xf32>
    %c0_85 = arith.constant 0 : index
    %c0_86 = arith.constant 0 : index
    %c245 = arith.constant 245 : index
    %200 = vector.load %arg9[%c0_85, %c0_86, %c245] : memref<1x16x280xf32, #tpu.memory_space<vmem>>, vector<1x16x19xf32>
    %201 = vector.shape_cast %200 : vector<1x16x19xf32> to vector<16x19xf32>
    %202 = vector.shape_cast %199 : vector<16x19xf32> to vector<1x16x19xf32>
    tpu.vector_store %arg9[%c0_85, %c0_86, %c245], %202 {strides = array<i32>} : memref<1x16x280xf32, #tpu.memory_space<vmem>>, vector<1x16x19xf32>,
    %c0_87 = arith.constant 0 : index
    %c0_88 = arith.constant 0 : index
    %c264 = arith.constant 264 : index
    %203 = vector.load %arg9[%c0_87, %c0_88, %c264] : memref<1x16x280xf32, #tpu.memory_space<vmem>>, vector<1x16x16xf32>
    %204 = vector.shape_cast %203 : vector<1x16x16xf32> to vector<16x16xf32>
    %205 = vector.shape_cast %133 : vector<16x16xf32> to vector<1x16x16xf32>
    tpu.vector_store %arg9[%c0_87, %c0_88, %c264], %205 {strides = array<i32>} : memref<1x16x280xf32, #tpu.memory_space<vmem>>, vector<1x16x16xf32>,
    return
  }
  func.func @transform_0(%arg0: i32) -> (i32, i32, i32) {
    %c0_i32 = arith.constant 0 : i32
    %c0_i32_0 = arith.constant 0 : i32
    %c0_i32_1 = arith.constant 0 : i32
    return %arg0, %c0_i32, %c0_i32_0 : i32, i32, i32
  }
  func.func @transform_1(%arg0: i32) -> (i32, i32, i32) {
    %c0_i32 = arith.constant 0 : i32
    %c0_i32_0 = arith.constant 0 : i32
    %c0_i32_1 = arith.constant 0 : i32
    return %arg0, %c0_i32, %c0_i32_0 : i32, i32, i32
  }
  func.func @transform_2(%arg0: i32) -> (i32, i32, i32) {
    %c0_i32 = arith.constant 0 : i32
    %c0_i32_0 = arith.constant 0 : i32
    %c0_i32_1 = arith.constant 0 : i32
    return %arg0, %c0_i32, %c0_i32_0 : i32, i32, i32
  }
  func.func @transform_3(%arg0: i32) -> (i32, i32, i32) {
    %c0_i32 = arith.constant 0 : i32
    %c0_i32_0 = arith.constant 0 : i32
    %c0_i32_1 = arith.constant 0 : i32
    return %arg0, %c0_i32, %c0_i32_0 : i32, i32, i32
  }
  func.func @transform_4(%arg0: i32) -> (i32, i32, i32) {
    %c0_i32 = arith.constant 0 : i32
    %c0_i32_0 = arith.constant 0 : i32
    %c0_i32_1 = arith.constant 0 : i32
    return %arg0, %c0_i32, %c0_i32_0 : i32, i32, i32
  }
  func.func @transform_5(%arg0: i32) -> (i32, i32, i32) {
    %c0_i32 = arith.constant 0 : i32
    %c0_i32_0 = arith.constant 0 : i32
    %c0_i32_1 = arith.constant 0 : i32
    return %arg0, %c0_i32, %c0_i32_0 : i32, i32, i32
  }
  func.func @transform_6(%arg0: i32) -> (i32, i32) {
    %c0_i32 = arith.constant 0 : i32
    %c0_i32_0 = arith.constant 0 : i32
    %c0_i32_1 = arith.constant 0 : i32
    return %c0_i32, %c0_i32_0 : i32, i32
  }
  func.func @transform_7(%arg0: i32) -> (i32, i32) {
    %c0_i32 = arith.constant 0 : i32
    %c0_i32_0 = arith.constant 0 : i32
    %c0_i32_1 = arith.constant 0 : i32
    return %c0_i32, %c0_i32_0 : i32, i32
  }
  func.func @transform_8(%arg0: i32) -> (i32, i32, i32) {
    %c0_i32 = arith.constant 0 : i32
    %c0_i32_0 = arith.constant 0 : i32
    %c0_i32_1 = arith.constant 0 : i32
    return %arg0, %c0_i32, %c0_i32_0 : i32, i32, i32
  }
}

</mosaic_0001>

<bundles_post_ra>
// kernel: tpu_custom_call.1
= control target key start
LH: loop header
LB: loop body
LE: loop exit
PB: predicated region body
PF: predicated region fallthrough
CT: control target
= control target key end

     0   :  { %s3300_s0 = inlined_call_operand.vmem [shape: f32[4,64,19], index: 0, kind: input, shape index: {}]   ;;  %s3301_s1 = inlined_call_operand.vmem [shape: f32[4,16,19], index: 1, kind: input, shape index: {}]   ;;  %s3302_s2 = inlined_call_operand.vmem [shape: f32[4,16,3], index: 2, kind: input, shape index: {}]   ;;  %s3303_s3 = inlined_call_operand.vmem [shape: f32[4,3,64], index: 3, kind: input, shape index: {}]   ;;  %s3304_s4 = inlined_call_operand.vmem [shape: f32[4,1,64], index: 4, kind: input, shape index: {}]   ;;  %s3305_s5 = inlined_call_operand.vmem [shape: f32[4,16,1], index: 5, kind: input, shape index: {}]   ;;  %s3306_s6 = inlined_call_operand.vmem [shape: f32[1,19], index: 6, kind: input, shape index: {}]   ;;  %s3307_s7 = inlined_call_operand.vmem [shape: f32[1,19], index: 7, kind: input, shape index: {}]   ;;  %s3308_s8 = inlined_call_operand.hbm [shape: f32[4,16,280], index: 8, kind: output, shape index: {}]  }
   0x1   :  { %3309 = sst [smem:[#allocation5_spill]] %s3300_s0 }
   0x2   :  { %3310 = sst [smem:[#allocation6_spill]] %s3301_s1 }
   0x3   :  { %13 = vsyncpa [#allocation3], 0 }
   0x4   :  { %15 = vsyncpa [#allocation3 + $0x1], 0  ;;  %s2408_s27 = smov 0   ;;  %s2410_s28 = smov 0  }
   0x5   :  { %s2412_s29 = smov 0   ;;  %s2414_s30 = smov 0  }
   0x6 LB: > { %s2429_s9 = sadd.s32 4294967295, %s2339_s30   ;;  %s2089_s10 = sadd.s32 4294967294, %s2339_s30   ;;  %s2339_s30 = sphi %s2414_s30, %s3318_s30   ;;  %s2335_s29 = sphi %s2412_s29, %s3317_s29   ;;  %s2331_s28 = sphi %s2410_s28, %s3316_s28   ;;  %s2327_s27 = sphi %s2408_s27, %s3315_s27  }
   0x7   : > { %s2433_s11 = sadd.s32 1, %s2339_s30   ;;  %s226_s12 = sadd.s32 1, %s2335_s29 }
   0x8   : > { %s223_s13 = ssub.s32 %s2339_s30, %s2433_s11  ;;  %p236_p0 = scmp.ne.s32.totalorder %s2335_s29, %s2331_s28 }
   0x9   : > { %p224_p1 = scmp.eq.s32.totalorder %s223_s13, 0  ;;  %p237_p2 = scmp.eq.s32.totalorder %s2429_s9, 3 }
   0xa   : > { %p242_p3 = scmp.ne.s32.totalorder %s2331_s28, %s2327_s27  ;;  %p243_p4 = scmp.eq.s32.totalorder %s2089_s10, 3 }
   0xb   : > { %s2444_s14 = scalar_select %p224_p1, %s2335_s29, %s226_s12  }
   0xc   : > { %p2446_p5 = por %p237_p2, %p236_p0  ;;  %p2450_p6 = por %p243_p4, %p242_p3 }
   0xd   : > { %p2092_p7 = scmp.ge.s32.totalorder %s2339_s30, 1  ;;  %p312_p8 = scmp.lt.s32.totalorder %s2339_s30, 5 }
   0xf   : > { %p313_p9 = pnand %p2092_p7, %p312_p8 }
  0x10   : > { %p368_p10 = scmp.lt.s32.totalorder (!%p313_p9), %s2429_s9, 3  ;;  %s3313_s0 = sld [smem:[#allocation5_spill]] (!%p313_p9) }
  0x11   : > { %316 = sbr.rel (%p313_p9) target bundleno = 2068 (0x814), region = 52  ;;  %s3314_s1 = sld [smem:[#allocation6_spill]] (!%p313_p9) }
  0x12   : > { %s2346_s10 = smov (!%p313_p9), 124   ;;  %s2348_s13 = smov (!%p313_p9), 31  }
  0x16   : > { %s2458_s17 = scalar_select %p368_p10, %s2429_s9, 3  ;;  %vm433_vm0 = vcmask 1042432   ;;  %v2341_v0 = vmov 0   ;;  %vm426_vm1 = vcmask 23552   ;;  %v624_v47 = vlaneseq }
  0x17   : > { %2264 = vset.pattern.permute.xlu0 %v2341_v0  ;;  %2265 = vset.pattern.permute.xlu2 %v2341_v0  ;;  %vm632_vm2 = vcmask 523264  }
  0x18   : > { %s2099_s18 = sshll.u32 %s2458_s17, 2  ;;  %s2465_s22 = sshll.u32 %s2458_s17, 4  ;;  %2266 = vset.pattern.permute.xlu1 %v2341_v0  ;;  %v2479_v55 = vand.u32 127, %v624_v47 }
  0x19   : > { %s386_s21 = scalar_lea.vmem %s3303_s3, %s2099_s18  ;;  %s382_s25 = scalar_lea.vmem %s3302_s2, %s2465_s22 }
  0x1a   : > { %v407_v1 = vld [vmem:[%s386_s21] sm:$0x7]  ;;  %s394_s12 = scalar_lea.vmem %s3305_s5, %s2465_s22  ;;  %v406_v6 = vld [vmem:[%s382_s25 + $0x8] sm:$0xff]  ;;  %s389_s19 = scalar_lea.vmem %s3304_s4, %s2458_s17 }
  0x1b   : > { %v435_v2 = vsel %vm433_vm0, %v407_v1, 0  ;;  %v405_v4 = vld [vmem:[%s382_s25] sm:$0xff]  ;;  %v431_v10 = vsel %vm426_vm1, %v406_v6, 0  ;;  %v410_v20 = vld [vmem:[%s394_s12 + $0x8] sm:$0xff]  ;;  %s2169_s20 = sshll.u32 %s2458_s17, 6  ;;  %s377_s26 = scalar_lea.vmem %s3314_s1, %s2465_s22 }
  0x1c   : > { %v452_v3 = vand.u32 4294901760, %v435_v2  ;;  %v428_v5 = vsel %vm426_vm1, %v405_v4, 0  ;;  %v409_v7 = vld [vmem:[%s394_s12] sm:$0xff]  ;;  %v462_v11 = vand.u32 4294901760, %v431_v10  ;;  %s2540_s24 = scalar_lea.vmem %s3313_s0, %s2169_s20  ;;  %s2345_s22 = smov 19  }
  0x1d   : > { %v454_v9 = vand.u32 4294901760, %v428_v5  ;;  %413 = vperm.xlu0 %2264, %v409_v7   ;;  %v2267_v34 = vld [vmem:[%s389_s19] ss:$0 sm:$0xff]  ;;  %s2347_s12 = smov 54   ;;  %s2349_s18 = smov 66  }
  0x1e   : > { %v487_v8 = vsub.f32 %v435_v2, %v452_v3  ;;  %546 = vmatpush.msra.mxu3 %v452_v3  ;;  %453 = vmatpush.msra.mxu0 %v452_v3  ;;  %v463_v14 = vsub.f32 %v431_v10, %v462_v11  ;;  %s2351_s1 = smov 89  }
  0x1f   : > { %v455_v12 = vsub.f32 %v428_v5, %v454_v9 }
  0x20   : > { %518 = vmatpush.msra.mxu2 %v487_v8  ;;  %v488_v13 = vand.u32 4294901760, %v487_v8  ;;  %v464_v19 = vand.u32 4294901760, %v463_v14 }
  0x21   : > { %521 = vmatmul.f32.vlgmr.msra.gmra.mxu2 %v455_v12  ;;  %v456_v15 = vand.u32 4294901760, %v455_v12 }
  0x22   : > { %v489_v16 = vsub.f32 %v487_v8, %v488_v13  ;;  %578 = vmatpush.msrb.mxu0 %v488_v13  ;;  %v465_v22 = vsub.f32 %v463_v14, %v464_v19 }
  0x23   : > { %550 = vmatmul.f32.vlgmr.msra.gmra.mxu3 %v456_v15  ;;  %v457_v17 = vsub.f32 %v455_v12, %v456_v15 }
  0x24   : > { %v490_v18 = vand.u32 4294901760, %v489_v16  ;;  %v466_v23 = vand.u32 4294901760, %v465_v22 }
  0x25   : > { %v458_v21 = vand.u32 4294901760, %v457_v17  ;;  %418 = vperm.xlu0 %2264, %v410_v20  }
  0x26   : > { %491 = vmatpush.msra.mxu1 %v490_v18 }
  0x27   : > { %493 = vmatmul.f32.vlgmr.msra.gmra.mxu1 %v454_v9  ;;  %459 = vmatmul.f32.vlgmr.msra.gmra.mxu0 %v458_v21 }
  0x28   : > { %604 = vmatpush.msrb.mxu1 %v452_v3 }
  0x29   : > { %526 = vmatmul.f32.gmra.mxu2 %v463_v14 }
  0x2b   : > { %556 = vmatmul.f32.gmra.mxu3 %v464_v19 }
  0x2f   : > { %497 = vmatmul.f32.gmra.mxu1 %v462_v11  ;;  %467 = vmatmul.f32.gmra.mxu0 %v466_v23 }
  0x37   : > { %606 = vmatmul.f32.vlgmr.msrb.gmra.mxu1 %v454_v9  ;;  %580 = vmatmul.f32.vlgmr.msrb.gmra.mxu0 %v454_v9 }
  0x3f   : > { %610 = vmatmul.f32.gmra.mxu1 %v462_v11  ;;  %584 = vmatmul.f32.gmra.mxu0 %v462_v11 }
  0x8f   : > { %v414_v35 = vpop.permute.xlu0 %413 }
  0x90   : > { %v424_v41 = vadd.f32 %v2267_v34, %v414_v35  ;;  %v402_v35 = vld [vmem:[%s2540_s24 + $0x38] sm:$0xff] }
  0x97   : > { %v419_v52 = vpop.permute.xlu0 %418 }
  0x98   : > { %v425_v56 = vadd.f32 %v2267_v34, %v419_v52 }
  0xa4   : > { %v494_v24 = vpop.f32.mrf.mxu1  ;;  %v460_v25 = vpop.f32.mrf.mxu0 }
  0xa5   : > { %v522_v26 = vpop.f32.mrf.mxu2  ;;  %v495_v27 = vadd.f32 %v494_v24, %v460_v25 }
  0xa6   : > { %v551_v30 = vpop.f32.mrf.mxu3 }
  0xa7   : > { %v523_v31 = vadd.f32 %v522_v26, %v495_v27 }
  0xa9   : > { %v552_v32 = vadd.f32 %v551_v30, %v523_v31 }
  0xac   : > { %v498_v28 = vpop.f32.mrf.mxu1  ;;  %v468_v29 = vpop.f32.mrf.mxu0 }
  0xad   : > { %v499_v33 = vadd.f32 %v498_v28, %v468_v29  ;;  %v527_v37 = vpop.f32.mrf.mxu2 }
  0xae   : > { %v557_v43 = vpop.f32.mrf.mxu3 }
  0xaf   : > { %v528_v40 = vadd.f32 %v527_v37, %v499_v33  ;;  %v2544_v37 = vand.u32 4294901760, %v402_v35 }
  0xb1   : > { %v558_v45 = vadd.f32 %v557_v43, %v528_v40  ;;  %2173 = vmatpush.msrb.mxu2 %v2544_v37  ;;  %894 = vmatpush.msra.mxu0 %v2544_v37 }
  0xb4   : > { %v607_v36 = vpop.f32.mrf.mxu1  ;;  %v581_v38 = vpop.f32.mrf.mxu0 }
  0xb5   : > { %v582_v39 = vadd.f32 %v581_v38, %v552_v32 }
  0xb7   : > { %v608_v42 = vadd.f32 %v607_v36, %v582_v39  ;;  %v401_v36 = vld [vmem:[%s2540_s24 + $0x30] sm:$0xff] }
  0xb8   : > { %v2546_v38 = vand.u32 4294901760, %v401_v36 }
  0xb9   : > { %v614_v44 = vmul.f32 2.0, %v608_v42 }
  0xba   : > { %v2555_v42 = vsub.f32 %v401_v36, %v2546_v38  ;;  %2174 = vmatpush.msrb.mxu2 %v2546_v38  ;;  %896 = vmatpush.msra.mxu0 %v2546_v38 }
  0xbb   : > { %v616_v46 = vsub.f32 %v424_v41, %v614_v44  ;;  %v2552_v41 = vsub.f32 %v402_v35, %v2544_v37 }
  0xbc   : > { %v585_v48 = vpop.f32.mrf.mxu0  ;;  %v611_v49 = vpop.f32.mrf.mxu1  ;;  %v1054_v44 = vand.u32 4294901760, %v2555_v42 }
  0xbd   : > { %v586_v50 = vadd.f32 %v585_v48, %v558_v45  ;;  %v618_v51 = vmax.f32 %v616_v46, 0.0  ;;  %v1048_v43 = vand.u32 4294901760, %v2552_v41 }
  0xbe   : > { %v1055_v48 = vsub.f32 %v2555_v42, %v1054_v44 }
  0xbf   : > { %v612_v53 = vadd.f32 %v611_v49, %v586_v50  ;;  %v620_v54 = vadd.f32 1.0, %v618_v51  ;;  %v1049_v47 = vsub.f32 %v2552_v41, %v1048_v43 }
  0xc0   : > { %v1056_v50 = vand.u32 4294901760, %v1055_v48 }
  0xc1   : > { %v615_v57 = vmul.f32 2.0, %v612_v53  ;;  %v626_v58 = vand.u32 4294967232, %v620_v54  ;;  %v1050_v49 = vand.u32 4294901760, %v1049_v47 }
  0xc3   : > { %v617_v59 = vsub.f32 %v425_v56, %v615_v57  ;;  %v628_v60 = vor.u32 %v626_v58, %v2479_v55  ;;  %2181 = vmatpush.msrb.mxu3 %v1050_v49  ;;  %1051 = vmatpush.msra.mxu1 %v1050_v49  ;;  %v400_v56 = vld [vmem:[%s2540_s24 + $0x28] sm:$0xff]  ;;  %v399_v58 = vld [vmem:[%s2540_s24 + $0x20] sm:$0xff] }
  0xc4   : > { %v2582_v57 = vand.u32 4294901760, %v400_v56 }
  0xc5   : > { %v619_v61 = vmax.f32 %v617_v59, 0.0  ;;  %v633_v62 = vsel %vm632_vm2, %v628_v60, inf  ;;  %2182 = vmatpush.msrb.mxu3 %v1056_v50  ;;  %1057 = vmatpush.msra.mxu1 %v1056_v50 }
  0xc6   : > { %634 = vmin.xlane.f32.xlu1 %v633_v62  ;;  %v1059_v59 = vsub.f32 %v400_v56, %v2582_v57  ;;  %2175 = vmatpush.msrb.mxu2 %v2582_v57 }
  0xc7   : > { %v621_v63 = vadd.f32 1.0, %v619_v61  ;;  %898 = vmatpush.msra.mxu0 %v2582_v57  ;;  %v398_v61 = vld [vmem:[%s2540_s24 + $0x18] sm:$0xff] }
  0xc8   : > { %v1060_v62 = vand.u32 4294901760, %v1059_v59 }
  0xc9   : > { %v627_v0 = vand.u32 4294967232, %v621_v63 }
  0xcb   : > { %v629_v1 = vor.u32 %v627_v0, %v2479_v55  ;;  %v2592_v0 = vand.u32 4294901760, %v398_v61 }
  0xcd   : > { %v636_v2 = vsel %vm632_vm2, %v629_v1, inf }
  0xce   : > { %637 = vmin.xlane.f32.xlu1 %v636_v2  ;;  %v1061_v2 = vsub.f32 %v1059_v59, %v1060_v62 }
 0x139   : > { %v2485_v3 = vpop.xlane.xlu1 %634 }
 0x13a   : > { %v641_v4 = vand.u32 63, %v2485_v3 }
 0x13c   : > { %vm643_vm3 = vcmp.eq.s32.totalorder %v2479_v55, %v641_v4 }
 0x13d   : > { %v645_v5 = vsel %vm643_vm3, 3e+38, %v628_v60  ;;  %v2586_v60 = vand.u32 4294901760, %v399_v58 }
 0x13e   : > { %v647_v6 = vsel %vm632_vm2, %v645_v5, inf }
 0x13f   : > { %648 = vmin.xlane.f32.xlu2 %v647_v6  ;;  %v1065_v63 = vsub.f32 %v399_v58, %v2586_v60  ;;  %2176 = vmatpush.msrb.mxu2 %v2586_v60  ;;  %v1071_v6 = vsub.f32 %v398_v61, %v2592_v0 }
 0x140   : > { %900 = vmatpush.msra.mxu0 %v2586_v60 }
 0x141   : > { %v2492_v7 = vpop.xlane.xlu1 %637  ;;  %2177 = vmatpush.msrb.mxu2 %v2592_v0 }
 0x142   : > { %v642_v8 = vand.u32 63, %v2492_v7  ;;  %902 = vmatpush.msra.mxu0 %v2592_v0 }
 0x144   : > { %vm644_vm4 = vcmp.eq.s32.totalorder %v2479_v55, %v642_v8 }
 0x145   : > { %v646_v9 = vsel %vm644_vm4, 3e+38, %v629_v1  ;;  %v397_v1 = vld [vmem:[%s2540_s24 + $0x10] sm:$0xff] }
 0x146   : > { %v650_v10 = vsel %vm632_vm2, %v646_v9, inf }
 0x147   : > { %651 = vmin.xlane.f32.xlu2 %v650_v10  ;;  %v396_v10 = vld [vmem:[%s2540_s24 + $0x8] sm:$0xff] }
 0x1b2   : > { %v2499_v11 = vpop.xlane.xlu2 %648 }
 0x1b3   : > { %v655_v12 = vand.u32 63, %v2499_v11 }
 0x1b5   : > { %vm657_vm5 = vcmp.eq.s32.totalorder %v2479_v55, %v655_v12 }
 0x1b6   : > { %v659_v13 = vsel %vm657_vm5, 3e+38, %v645_v5  ;;  %v1066_v5 = vand.u32 4294901760, %v1065_v63 }
 0x1b7   : > { %v661_v14 = vsel %vm632_vm2, %v659_v13, inf }
 0x1b8   : > { %662 = vmin.xlane.f32.xlu0 %v661_v14  ;;  %v1067_v14 = vsub.f32 %v1065_v63, %v1066_v5 }
 0x1ba   : > { %v2506_v15 = vpop.xlane.xlu2 %651 }
 0x1bb   : > { %v656_v16 = vand.u32 63, %v2506_v15 }
 0x1bd   : > { %vm658_vm6 = vcmp.eq.s32.totalorder %v2479_v55, %v656_v16 }
 0x1be   : > { %v660_v17 = vsel %vm658_vm6, 3e+38, %v646_v9  ;;  %v2598_v9 = vand.u32 4294901760, %v397_v1 }
 0x1bf   : > { %v664_v18 = vsel %vm632_vm2, %v660_v17, inf }
 0x1c0   : > { %665 = vmin.xlane.f32.xlu1 %v664_v18  ;;  %v1077_v18 = vsub.f32 %v397_v1, %v2598_v9  ;;  %2178 = vmatpush.msrb.mxu2 %v2598_v9 }
 0x1c1   : > { %904 = vmatpush.msra.mxu0 %v2598_v9 }
 0x22b   : > { %v2513_v19 = vpop.xlane.xlu0 %662 }
 0x22c   : > { %v669_v20 = vand.u32 63, %v2513_v19 }
 0x22e   : > { %vm671_vm7 = vcmp.eq.s32.totalorder %v2479_v55, %v669_v20 }
 0x22f   : > { %v673_v21 = vsel %vm671_vm7, 3e+38, %v659_v13  ;;  %v1062_v13 = vand.u32 4294901760, %v1061_v2 }
 0x230   : > { %v675_v22 = vsel %vm632_vm2, %v673_v21, inf }
 0x231   : > { %676 = vmin.xlane.f32.xlu2 %v675_v22  ;;  %v395_v22 = vld [vmem:[%s2540_s24] sm:$0xff]  ;;  %2183 = vmatpush.msrb.mxu3 %v1062_v13 }
 0x232   : > { %1063 = vmatpush.msra.mxu1 %v1062_v13 }
 0x233   : > { %v2520_v23 = vpop.xlane.xlu1 %665 }
 0x234   : > { %v670_v24 = vand.u32 63, %v2520_v23 }
 0x236   : > { %vm672_vm8 = vcmp.eq.s32.totalorder %v2479_v55, %v670_v24 }
 0x237   : > { %v674_v25 = vsel %vm672_vm8, 3e+38, %v660_v17  ;;  %v1072_v17 = vand.u32 4294901760, %v1071_v6 }
 0x238   : > { %v678_v26 = vsel %vm632_vm2, %v674_v25, inf }
 0x239   : > { %679 = vmin.xlane.f32.xlu1 %v678_v26  ;;  %v1073_v26 = vsub.f32 %v1071_v6, %v1072_v17 }
 0x2a4   : > { %v2527_v27 = vpop.xlane.xlu2 %676 }
 0x2a5   : > { %v683_v28 = vand.u32 63, %v2527_v27 }
 0x2a7   : > { %vm685_vm9 = vcmp.eq.s32.totalorder %v2479_v55, %v683_v28 }
 0x2a8   : > { %v687_v29 = vsel %vm685_vm9, 3e+38, %v673_v21  ;;  %v905_v21 = vand.u32 4294901760, %v396_v10 }
 0x2a9   : > { %v689_v30 = vsel %vm632_vm2, %v687_v29, inf }
 0x2aa   : > { %690 = vmin.xlane.f32.xlu2 %v689_v30  ;;  %v907_v30 = vand.u32 4294901760, %v395_v22  ;;  %2179 = vmatpush.msrb.mxu2 %v905_v21 }
 0x2ab   : > { %906 = vmatpush.msra.mxu0 %v905_v21 }
 0x2ac   : > { %v680_v31 = vpop.xlane.xlu1 %679  ;;  %2180 = vmatpush.msrb.mxu2 %v907_v30 }
 0x2ad   : > { %v684_v32 = vand.u32 63, %v680_v31  ;;  %v1083_v31 = vsub.f32 %v396_v10, %v905_v21  ;;  %908 = vmatpush.msra.mxu0 %v907_v30 }
 0x2ae   : > { %1404 = vmatpush.msra.mxu2 %v1048_v43 }
 0x2af   : > { %vm686_vm10 = vcmp.eq.s32.totalorder %v2479_v55, %v684_v32  ;;  %v1084_v35 = vand.u32 4294901760, %v1083_v31  ;;  %1169 = vmatpush.msrb.mxu0 %v2552_v41 }
 0x2b0   : > { %v688_v33 = vsel %vm686_vm10, 3e+38, %v674_v25  ;;  %v1068_v25 = vand.u32 4294901760, %v1067_v14  ;;  %1408 = vmatpush.msra.mxu2 %v1054_v44 }
 0x2b1   : > { %v692_v34 = vsel %vm632_vm2, %v688_v33, inf  ;;  %v1085_v47 = vsub.f32 %v1083_v31, %v1084_v35  ;;  %1172 = vmatpush.msrb.mxu0 %v2555_v42 }
 0x2b2   : > { %693 = vmin.xlane.f32.xlu1 %v692_v34  ;;  %2184 = vmatpush.msrb.mxu3 %v1068_v25  ;;  %v1089_v34 = vsub.f32 %v395_v22, %v907_v30 }
 0x2b3   : > { %1069 = vmatpush.msra.mxu1 %v1068_v25  ;;  %v1086_v49 = vand.u32 4294901760, %v1085_v47  ;;  %1175 = vmatpush.msrb.mxu0 %v1059_v59 }
 0x2b4   : > { %1412 = vmatpush.msra.mxu2 %v1060_v62 }
 0x2b5   : > { %1178 = vmatpush.msrb.mxu0 %v1065_v63 }
 0x2b6   : > { %1416 = vmatpush.msra.mxu2 %v1066_v5 }
 0x2b7   : > { %1181 = vmatpush.msrb.mxu0 %v1071_v6 }
 0x2b8   : > { %1420 = vmatpush.msra.mxu2 %v1072_v17 }
 0x2b9   : > { %1184 = vmatpush.msrb.mxu0 %v1077_v18 }
 0x2bb   : > { %1187 = vmatpush.msrb.mxu0 %v1083_v31 }
 0x2bd   : > { %1190 = vmatpush.msrb.mxu0 %v1089_v34 }
 0x31d   : > { %v2548_v39 = vpop.xlane.xlu2 %690 }
 0x31e   : > { %v697_v40 = vand.u32 63, %v2548_v39 }
 0x320   : > { %vm699_vm11 = vcmp.eq.s32.totalorder %v2479_v55, %v697_v40 }
 0x321   : > { %v2566_v45 = vsel %vm699_vm11, 3e+38, %v687_v29  ;;  %v1078_v29 = vand.u32 4294901760, %v1077_v18 }
 0x322   : > { %v703_v46 = vsel %vm632_vm2, %v2566_v45, inf }
 0x323   : > { %704 = vmin.xlane.f32.xlu2 %v703_v46  ;;  %v1090_v46 = vand.u32 4294901760, %v1089_v34  ;;  %1424 = vmatpush.msra.mxu2 %v1078_v29 }
 0x325   : > { %v694_v51 = vpop.xlane.xlu1 %693  ;;  %v1091_v48 = vsub.f32 %v1089_v34, %v1090_v46  ;;  %1428 = vmatpush.msra.mxu2 %v1084_v35 }
 0x326   : > { %v698_v52 = vand.u32 63, %v694_v51 }
 0x327   : > { %v1092_v50 = vand.u32 4294901760, %v1091_v48  ;;  %1432 = vmatpush.msra.mxu2 %v1090_v46 }
 0x328   : > { %769 = vperm.xlu0 %2264, %v698_v52   ;;  %vm700_vm12 = vcmp.eq.s32.totalorder %v2479_v55, %v698_v52  ;;  %v2342_v52 = vmov 0.0  }
 0x329   : > { %v2577_v53 = vsel %vm700_vm12, 3e+38, %v688_v33  ;;  %v1079_v33 = vsub.f32 %v1077_v18, %v1078_v29 }
 0x32a   : > { %v706_v54 = vsel %vm632_vm2, %v2577_v53, inf }
 0x32b   : > { %707 = vmin.xlane.f32.xlu1 %v706_v54  ;;  %v1080_v36 = vand.u32 4294901760, %v1079_v33 }
 0x33b   : > { %763 = vperm.xlu2 %2265, %v684_v32   ;;  %v1074_v32 = vand.u32 4294901760, %v1073_v26 }
 0x33d   : > { %2185 = vmatpush.msrb.mxu3 %v1074_v32  ;;  %1075 = vmatpush.msra.mxu1 %v1074_v32 }
 0x33f   : > { %2186 = vmatpush.msrb.mxu3 %v1080_v36  ;;  %1081 = vmatpush.msra.mxu1 %v1080_v36 }
 0x341   : > { %2187 = vmatpush.msrb.mxu3 %v1086_v49  ;;  %1087 = vmatpush.msra.mxu1 %v1086_v49 }
 0x343   : > { %2188 = vmatpush.msrb.mxu3 %v1092_v50  ;;  %1093 = vmatpush.msra.mxu1 %v1092_v50 }
 0x345   : > { %1281 = vmatpush.msrb.mxu1 %v2544_v37  ;;  %1507 = vmatpush.msra.mxu3 %v2544_v37 }
 0x347   : > { %1283 = vmatpush.msrb.mxu1 %v2546_v38  ;;  %1509 = vmatpush.msra.mxu3 %v2546_v38 }
 0x349   : > { %1285 = vmatpush.msrb.mxu1 %v2582_v57  ;;  %1511 = vmatpush.msra.mxu3 %v2582_v57 }
 0x34b   : > { %1287 = vmatpush.msrb.mxu1 %v2586_v60  ;;  %1513 = vmatpush.msra.mxu3 %v2586_v60 }
 0x34d   : > { %1289 = vmatpush.msrb.mxu1 %v2592_v0  ;;  %1515 = vmatpush.msra.mxu3 %v2592_v0 }
 0x34f   : > { %1291 = vmatpush.msrb.mxu1 %v2598_v9  ;;  %1517 = vmatpush.msra.mxu3 %v2598_v9 }
 0x351   : > { %1293 = vmatpush.msrb.mxu1 %v905_v21  ;;  %1519 = vmatpush.msra.mxu3 %v905_v21 }
 0x353   : > { %1295 = vmatpush.msrb.mxu1 %v907_v30  ;;  %1521 = vmatpush.msra.mxu3 %v907_v30 }
 0x396   : > { %v705_v37 = vpop.xlane.xlu2 %704 }
 0x397   : > { %v711_v38 = vand.u32 63, %v705_v37 }
 0x399   : > { %vm713_vm13 = vcmp.eq.s32.totalorder %v2479_v55, %v711_v38 }
 0x39a   : > { %v715_v41 = vsel %vm713_vm13, 3e+38, %v2566_v45  ;;  %v770_v14 = vpop.permute.xlu0 %769 }
 0x39b   : > { %v717_v42 = vsel %vm632_vm2, %v715_v41, inf  ;;  %vm798_vm4 = vcmp.eq.s32.totalorder %v2479_v55, %v770_v14 }
 0x39c   : > { %718 = vmin.xlane.f32.xlu2 %v717_v42  ;;  %v2671_v17 = vsel %vm798_vm4, 1.0, %v2342_v52 }
 0x39d   : > { %v865_v22 = vsel %vm632_vm2, %v2671_v17, 0 }
 0x39e   : > { %v708_v43 = vpop.xlane.xlu1 %707  ;;  %v764_v44 = vpop.permute.xlu2 %763  ;;  %v2687_v25 = vsub.f32 %v865_v22, %v865_v22 }
 0x39f   : > { %v712_v51 = vand.u32 63, %v708_v43  ;;  %vm796_vm14 = vcmp.eq.s32.totalorder %v2479_v55, %v764_v44 }
 0x3a0   : > { %v2630_v54 = vsel %vm796_vm14, 1.0, %v2342_v52  ;;  %v983_v31 = vand.u32 4294901760, %v2687_v25 }
 0x3a1   : > { %v859_v56 = vsel %vm632_vm2, %v2630_v54, 0  ;;  %2125 = vmatmul.msk.f32.vlgmr.msrb.gmra.mxu3 %vm632_vm2, %v2630_v54  ;;  %vm714_vm15 = vcmp.eq.s32.totalorder %v2479_v55, %v712_v51 }
 0x3a2   : > { %v2637_v45 = vsub.f32 %v859_v56, %v859_v56  ;;  %v716_v57 = vsel %vm714_vm15, 3e+38, %v2577_v53  ;;  %v984_v32 = vsub.f32 %v2687_v25, %v983_v31 }
 0x3a3   : > { %v720_v58 = vsel %vm632_vm2, %v716_v57, inf }
 0x3a4   : > { %721 = vmin.xlane.f32.xlu1 %v720_v58  ;;  %v967_v59 = vand.u32 4294901760, %v2637_v45 }
 0x3a6   : > { %v968_v60 = vsub.f32 %v2637_v45, %v967_v59 }
 0x3a8   : > { %v969_v61 = vand.u32 4294901760, %v968_v60 }
 0x3aa   : > { %970 = vmatmul.f32.vlgmr.msrb.gmra.mxu2 %v969_v61 }
 0x3b4   : > { %742 = vperm.xlu2 %2265, %v641_v4  }
 0x3bd   : > { %766 = vperm.xlu1 %2266, %v697_v40  }
 0x3c5   : > { %772 = vperm.xlu1 %2266, %v711_v38  }
 0x3cd   : > { %775 = vperm.xlu1 %2266, %v712_v51  }
 0x40f   : > { %v719_v53 = vpop.xlane.xlu2 %718 }
 0x410   : > { %v725_v62 = vand.u32 63, %v719_v53 }
 0x412   : > { %778 = vperm.xlu1 %2266, %v725_v62   ;;  %vm727_vm0 = vcmp.eq.s32.totalorder %v2479_v55, %v725_v62 }
 0x413   : > { %v729_v63 = vsel %vm727_vm0, 3e+38, %v715_v41 }
 0x414   : > { %v731_v0 = vsel %vm632_vm2, %v729_v63, inf }
 0x415   : > { %732 = vmin.xlane.f32.xlu0 %v731_v0 }
 0x417   : > { %v722_v1 = vpop.xlane.xlu1 %721  ;;  %v743_v2 = vpop.permute.xlu2 %742 }
 0x418   : > { %v726_v5 = vand.u32 63, %v722_v1  ;;  %vm789_vm1 = vcmp.eq.s32.totalorder %v2479_v55, %v743_v2 }
 0x419   : > { %v2653_v3 = vsel %vm789_vm1, 1.0, %v2342_v52 }
 0x41a   : > { %v838_v4 = vsel %vm632_vm2, %v2653_v3, 0  ;;  %781 = vperm.xlu1 %2266, %v726_v5   ;;  %2118 = vmatmul.msk.f32.vlgmr.msra.gmra.mxu1 %vm632_vm2, %v2653_v3  ;;  %vm728_vm3 = vcmp.eq.s32.totalorder %v2479_v55, %v726_v5 }
 0x41b   : > { %v2660_v39 = vsub.f32 %v838_v4, %v838_v4  ;;  %v730_v40 = vsel %vm728_vm3, 3e+38, %v716_v57 }
 0x41c   : > { %v734_v6 = vsel %vm632_vm2, %v730_v40, inf }
 0x41d   : > { %735 = vmin.xlane.f32.xlu2 %v734_v6  ;;  %v911_v9 = vand.u32 4294901760, %v2660_v39 }
 0x41f   : > { %v912_v10 = vsub.f32 %v2660_v39, %v911_v9 }
 0x421   : > { %v913_v13 = vand.u32 4294901760, %v912_v10 }
 0x423   : > { %914 = vmatmul.f32.vlgmr.msra.gmra.mxu0 %v913_v13 }
 0x429   : > { %745 = vperm.xlu0 %2264, %v642_v8  }
 0x42f   : > { %v767_v18 = vpop.permute.xlu1 %766 }
 0x430   : > { %vm797_vm5 = vcmp.eq.s32.totalorder %v2479_v55, %v767_v18 }
 0x431   : > { %v2675_v21 = vsel %vm797_vm5, 1.0, %v2342_v52  ;;  %748 = vperm.xlu0 %2264, %v655_v12  }
 0x432   : > { %v862_v7 = vsel %vm632_vm2, %v2675_v21, 0  ;;  %2126 = vmatmul.msk.f32.gmra.mxu3 %vm632_vm2, %v2675_v21 }
 0x433   : > { %v2685_v8 = vsub.f32 %v862_v7, %v862_v7 }
 0x435   : > { %760 = vperm.xlu2 %2265, %v683_v28   ;;  %v975_v26 = vand.u32 4294901760, %v2685_v8 }
 0x437   : > { %v773_v11 = vpop.permute.xlu1 %772  ;;  %v976_v12 = vsub.f32 %v2685_v8, %v975_v26 }
 0x438   : > { %vm799_vm6 = vcmp.eq.s32.totalorder %v2479_v55, %v773_v11 }
 0x439   : > { %v2697_v29 = vsel %vm799_vm6, 1.0, %v2342_v52  ;;  %751 = vperm.xlu0 %2264, %v656_v16   ;;  %v977_v30 = vand.u32 4294901760, %v976_v12  ;;  %v985_v16 = vand.u32 4294901760, %v984_v32  ;;  %v2797_v32 = vpop.f32.mrf.mxu3 }
 0x43a   : > { %v868_v27 = vsel %vm632_vm2, %v2697_v29, 0  ;;  %2127 = vmatmul.msk.f32.gmra.mxu3 %vm632_vm2, %v2671_v17 }
 0x43b   : > { %978 = vmatmul.f32.gmra.mxu2 %v977_v30  ;;  %v2706_v28 = vsub.f32 %v868_v27, %v868_v27 }
 0x43d   : > { %v991_v34 = vand.u32 4294901760, %v2706_v28 }
 0x43f   : > { %v776_v33 = vpop.permute.xlu1 %775  ;;  %v992_v46 = vsub.f32 %v2706_v28, %v991_v34 }
 0x440   : > { %vm800_vm7 = vcmp.eq.s32.totalorder %v2479_v55, %v776_v33 }
 0x441   : > { %v2713_v15 = vsel %vm800_vm7, 1.0, %v2342_v52  ;;  %754 = vperm.xlu0 %2264, %v669_v20   ;;  %v993_v19 = vand.u32 4294901760, %v992_v46 }
 0x442   : > { %v871_v35 = vsel %vm632_vm2, %v2713_v15, 0  ;;  %2128 = vmatmul.msk.f32.gmra.mxu3 %vm632_vm2, %v2697_v29 }
 0x443   : > { %986 = vmatmul.f32.gmra.mxu2 %v985_v16  ;;  %v2722_v36 = vsub.f32 %v871_v35, %v871_v35 }
 0x445   : > { %v999_v20 = vand.u32 4294901760, %v2722_v36 }
 0x447   : > { %v1000_v47 = vsub.f32 %v2722_v36, %v999_v20 }
 0x449   : > { %757 = vperm.xlu0 %2264, %v670_v24   ;;  %v1001_v48 = vand.u32 4294901760, %v1000_v47 }
 0x44a   : > { %2129 = vmatmul.msk.f32.gmra.mxu3 %vm632_vm2, %v2713_v15 }
 0x44b   : > { %994 = vmatmul.f32.gmra.mxu2 %v993_v19 }
 0x453   : > { %1002 = vmatmul.f32.gmra.mxu2 %v1001_v48  ;;  %v2803_v48 = vpop.f32.mrf.mxu2 }
 0x484   : > { %v779_v49 = vpop.permute.xlu1 %778 }
 0x485   : > { %vm801_vm8 = vcmp.eq.s32.totalorder %v2479_v55, %v779_v49 }
 0x486   : > { %v2737_v50 = vsel %vm801_vm8, 1.0, %v2342_v52 }
 0x487   : > { %v874_v23 = vsel %vm632_vm2, %v2737_v50, 0  ;;  %2130 = vmatmul.msk.f32.gmra.mxu3 %vm632_vm2, %v2737_v50 }
 0x488   : > { %v2743_v24 = vsub.f32 %v874_v23, %v874_v23  ;;  %v733_v37 = vpop.xlane.xlu0 %732 }
 0x489   : > { %v739_v38 = vand.u32 63, %v733_v37 }
 0x48a   : > { %v1007_v41 = vand.u32 4294901760, %v2743_v24 }
 0x48b   : > { %784 = vperm.xlu1 %2266, %v739_v38  }
 0x48c   : > { %v782_v42 = vpop.permute.xlu1 %781  ;;  %v1008_v43 = vsub.f32 %v2743_v24, %v1007_v41 }
 0x48d   : > { %vm802_vm9 = vcmp.eq.s32.totalorder %v2479_v55, %v782_v42 }
 0x48e   : > { %v2751_v44 = vsel %vm802_vm9, 1.0, %v2342_v52  ;;  %v1009_v51 = vand.u32 4294901760, %v1008_v43 }
 0x48f   : > { %v877_v56 = vsel %vm632_vm2, %v2751_v44, 0  ;;  %2131 = vmatmul.msk.f32.gmra.mxu3 %vm632_vm2, %v2751_v44 }
 0x490   : > { %v2757_v57 = vsub.f32 %v877_v56, %v877_v56  ;;  %v736_v58 = vpop.xlane.xlu2 %735  ;;  %1010 = vmatmul.f32.gmra.mxu2 %v1009_v51 }
 0x491   : > { %v740_v60 = vand.u32 63, %v736_v58 }
 0x492   : > { %v1015_v61 = vand.u32 4294901760, %v2757_v57 }
 0x493   : > { %787 = vperm.xlu1 %2266, %v740_v60  }
 0x494   : > { %v1016_v53 = vsub.f32 %v2757_v57, %v1015_v61 }
 0x496   : > { %v1017_v62 = vand.u32 4294901760, %v1016_v53 }
 0x498   : > { %1018 = vmatmul.f32.gmra.mxu2 %v1017_v62  ;;  %v761_v46 = vpop.permute.xlu2 %760 }
 0x499   : > { %vm795_vm14 = vcmp.eq.s32.totalorder %v2479_v55, %v761_v46 }
 0x49a   : > { %v2811_v42 = vsel %vm795_vm14, 1.0, %v2342_v52  ;;  %vm1876_vm14 = vcmask 384248  }
 0x49b   : > { %v746_v63 = vpop.permute.xlu0 %745  ;;  %v856_v60 = vsel %vm632_vm2, %v2811_v42, 0 }
 0x49c   : > { %vm790_vm10 = vcmp.eq.s32.totalorder %v2479_v55, %v746_v63 }
 0x49d   : > { %v2765_v0 = vsel %vm790_vm10, 1.0, %v2342_v52 }
 0x49e   : > { %v841_v1 = vsel %vm632_vm2, %v2765_v0, 0  ;;  %2119 = vmatmul.msk.f32.gmra.mxu1 %vm632_vm2, %v2765_v0 }
 0x49f   : > { %v2771_v2 = vsub.f32 %v841_v1, %v841_v1 }
 0x4a1   : > { %v919_v5 = vand.u32 4294901760, %v2771_v2 }
 0x4a3   : > { %v749_v4 = vpop.permute.xlu0 %748  ;;  %v920_v40 = vsub.f32 %v2771_v2, %v919_v5 }
 0x4a4   : > { %vm791_vm11 = vcmp.eq.s32.totalorder %v2479_v55, %v749_v4  ;;  %v958_v4 = vsub.f32 %v856_v60, %v856_v60 }
 0x4a5   : > { %v2779_v6 = vsel %vm791_vm11, 1.0, %v2342_v52  ;;  %v921_v10 = vand.u32 4294901760, %v920_v40  ;;  %vm1777_vm11 = vcmask 285848  }
 0x4a6   : > { %v844_v13 = vsel %vm632_vm2, %v2779_v6, 0  ;;  %2120 = vmatmul.msk.f32.gmra.mxu1 %vm632_vm2, %v2779_v6 }
 0x4a7   : > { %v2785_v14 = vsub.f32 %v844_v13, %v844_v13  ;;  %922 = vmatmul.f32.gmra.mxu0 %v921_v10 }
 0x4a9   : > { %v927_v18 = vand.u32 4294901760, %v2785_v14 }
 0x4ab   : > { %v752_v22 = vpop.permute.xlu0 %751  ;;  %v928_v7 = vsub.f32 %v2785_v14, %v927_v18 }
 0x4ac   : > { %vm792_vm12 = vcmp.eq.s32.totalorder %v2479_v55, %v752_v22 }
 0x4ad   : > { %v2791_v11 = vsel %vm792_vm12, 1.0, %v2342_v52  ;;  %v929_v12 = vand.u32 4294901760, %v928_v7  ;;  %v959_v7 = vand.u32 4294901760, %v958_v4  ;;  %vm1851_vm12 = vcmask 97280  }
 0x4ae   : > { %v847_v30 = vsel %vm632_vm2, %v2791_v11, 0  ;;  %2121 = vmatmul.msk.f32.gmra.mxu1 %vm632_vm2, %v2791_v11 }
 0x4af   : > { %v934_v27 = vsub.f32 %v847_v30, %v847_v30  ;;  %930 = vmatmul.f32.gmra.mxu0 %v929_v12 }
 0x4b1   : > { %v935_v33 = vand.u32 4294901760, %v934_v27 }
 0x4b3   : > { %v755_v16 = vpop.permute.xlu0 %754  ;;  %v936_v35 = vsub.f32 %v934_v27, %v935_v33 }
 0x4b4   : > { %vm793_vm13 = vcmp.eq.s32.totalorder %v2479_v55, %v755_v16  ;;  %v960_v16 = vsub.f32 %v958_v4, %v959_v7 }
 0x4b5   : > { %v2801_v19 = vsel %vm793_vm13, 1.0, %v2342_v52  ;;  %v937_v47 = vand.u32 4294901760, %v936_v35  ;;  %v1128_v37 = vpop.f32.mrf.mxu3  ;;  %vm1867_vm13 = vcmask 253024  }
 0x4b6   : > { %v850_v49 = vsel %vm632_vm2, %v2801_v19, 0  ;;  %2122 = vmatmul.msk.f32.gmra.mxu1 %vm632_vm2, %v2801_v19  ;;  %v961_v46 = vand.u32 4294901760, %v960_v16 }
 0x4b7   : > { %v942_v23 = vsub.f32 %v850_v49, %v850_v49  ;;  %938 = vmatmul.f32.gmra.mxu0 %v937_v47 }
 0x4b9   : > { %v943_v38 = vand.u32 4294901760, %v942_v23 }
 0x4bb   : > { %v758_v43 = vpop.permute.xlu0 %757  ;;  %v944_v51 = vsub.f32 %v942_v23, %v943_v38 }
 0x4bc   : > { %vm794_vm15 = vcmp.eq.s32.totalorder %v2479_v55, %v758_v43 }
 0x4bd   : > { %v2815_v56 = vsel %vm794_vm15, 1.0, %v2342_v52  ;;  %v945_v58 = vand.u32 4294901760, %v944_v51  ;;  %v1132_v10 = vpop.f32.mrf.mxu3  ;;  %vm1792_vm15 = vcmask 441624  }
 0x4be   : > { %v853_v53 = vsel %vm632_vm2, %v2815_v56, 0  ;;  %v979_v62 = vpop.f32.mrf.mxu2  ;;  %2123 = vmatmul.msk.f32.gmra.mxu1 %vm632_vm2, %v2815_v56 }
 0x4bf   : > { %v950_v63 = vsub.f32 %v853_v53, %v853_v53  ;;  %v2823_v1 = vadd.f32 %v1128_v37, %v979_v62  ;;  %946 = vmatmul.f32.gmra.mxu0 %v945_v58 }
 0x4c1   : > { %v951_v40 = vand.u32 4294901760, %v950_v63 }
 0x4c3   : > { %v952_v13 = vsub.f32 %v950_v63, %v951_v40 }
 0x4c5   : > { %v953_v22 = vand.u32 4294901760, %v952_v13  ;;  %v1136_v35 = vpop.f32.mrf.mxu3 }
 0x4c6   : > { %v987_v12 = vpop.f32.mrf.mxu2  ;;  %2124 = vmatmul.msk.f32.gmra.mxu1 %vm632_vm2, %v2811_v42 }
 0x4c7   : > { %v2827_v30 = vadd.f32 %v1132_v10, %v987_v12  ;;  %954 = vmatmul.f32.gmra.mxu0 %v953_v22 }
 0x4cd   : > { %v1140_v37 = vpop.f32.mrf.mxu3 }
 0x4ce   : > { %v995_v47 = vpop.f32.mrf.mxu2  ;;  %1299 = vmatmul.f32.vlgmr.msrb.gmra.mxu1 %v911_v9 }
 0x4cf   : > { %v2831_v49 = vadd.f32 %v1136_v35, %v995_v47  ;;  %962 = vmatmul.f32.gmra.mxu0 %v961_v46 }
 0x4d6   : > { %v1003_v43 = vpop.f32.mrf.mxu2  ;;  %1305 = vmatmul.f32.gmra.mxu1 %v919_v5 }
 0x4d7   : > { %v2835_v51 = vadd.f32 %v1140_v37, %v1003_v43  ;;  %1193 = vmatmul.f32.vlgmr.msrb.gmra.mxu0 %v2660_v39 }
 0x4de   : > { %1311 = vmatmul.f32.gmra.mxu1 %v927_v18 }
 0x4df   : > { %1198 = vmatmul.f32.gmra.mxu0 %v2771_v2 }
 0x4e6   : > { %1317 = vmatmul.f32.gmra.mxu1 %v935_v33 }
 0x4e7   : > { %1203 = vmatmul.f32.gmra.mxu0 %v2785_v14 }
 0x4ee   : > { %1323 = vmatmul.f32.gmra.mxu1 %v943_v38 }
 0x4ef   : > { %1208 = vmatmul.f32.gmra.mxu0 %v934_v27 }
 0x4f6   : > { %1329 = vmatmul.f32.gmra.mxu1 %v951_v40 }
 0x4f7   : > { %1213 = vmatmul.f32.gmra.mxu0 %v942_v23 }
 0x4fd   : > { %v785_v9 = vpop.permute.xlu1 %784 }
 0x4fe   : > { %vm803_vm0 = vcmp.eq.s32.totalorder %v2479_v55, %v785_v9  ;;  %1335 = vmatmul.f32.gmra.mxu1 %v959_v7 }
 0x4ff   : > { %v2842_v5 = vsel %vm803_vm0, 1.0, %v2342_v52  ;;  %1218 = vmatmul.f32.gmra.mxu0 %v950_v63  ;;  %vm1801_vm0 = vcmask 572848  }
 0x500   : > { %v880_v39 = vsel %vm632_vm2, %v2842_v5, 0  ;;  %2132 = vmatmul.msk.f32.gmra.mxu3 %vm632_vm2, %v2842_v5 }
 0x501   : > { %v2848_v2 = vsub.f32 %v880_v39, %v880_v39 }
 0x503   : > { %v1023_v14 = vand.u32 4294901760, %v2848_v2 }
 0x505   : > { %v788_v18 = vpop.permute.xlu1 %787  ;;  %v1024_v27 = vsub.f32 %v2848_v2, %v1023_v14 }
 0x506   : > { %vm804_vm1 = vcmp.eq.s32.totalorder %v2479_v55, %v788_v18  ;;  %1341 = vmatmul.f32.gmra.mxu1 %v967_v59 }
 0x507   : > { %v2856_v33 = vsel %vm804_vm1, 1.0, %v2342_v52  ;;  %1223 = vmatmul.f32.gmra.mxu0 %v958_v4  ;;  %v1025_v23 = vand.u32 4294901760, %v1024_v27  ;;  %v1096_v52 = vpop.f32.mrf.mxu1  ;;  %vm1891_vm1 = vcmask 540024  }
 0x508   : > { %v883_v38 = vsel %vm632_vm2, %v2856_v33, 0  ;;  %2133 = vmatmul.msk.f32.gmra.mxu3 %vm632_vm2, %v2856_v33 }
 0x509   : > { %v1030_v58 = vsub.f32 %v883_v38, %v883_v38  ;;  %1026 = vmatmul.f32.gmra.mxu2 %v1025_v23 }
 0x50a   : > { %v1144_v59 = vpop.f32.mrf.mxu3 }
 0x50b   : > { %v1031_v60 = vand.u32 4294901760, %v1030_v58 }
 0x50d   : > { %v1032_v53 = vsub.f32 %v1030_v58, %v1031_v60 }
 0x50e   : > { %1347 = vmatmul.f32.gmra.mxu1 %v975_v26  ;;  %v915_v26 = vpop.f32.mrf.mxu0 }
 0x50f   : > { %1228 = vmatmul.f32.gmra.mxu0 %v2637_v45  ;;  %v1033_v55 = vand.u32 4294901760, %v1032_v53 }
 0x510   : > { %2150 = vmatmul.msk.f32.vlgmr.msra.gmra.mxu3 %vm632_vm2, %v2653_v3 }
 0x511   : > { %1034 = vmatmul.f32.gmra.mxu2 %v1033_v55 }
 0x513   : > { %v1011_v62 = vpop.f32.mrf.mxu2 }
 0x514   : > { %v2867_v63 = vadd.f32 %v1144_v59, %v1011_v62 }
 0x516   : > { %1353 = vmatmul.f32.gmra.mxu1 %v983_v31 }
 0x517   : > { %1233 = vmatmul.f32.gmra.mxu0 %v2685_v8 }
 0x518   : > { %2151 = vmatmul.msk.f32.gmra.mxu3 %vm632_vm2, %v2765_v0 }
 0x519   : > { %2134 = vmatmul.msk.f32.vlgmr.msra.gmra.mxu2 %vm632_vm2, %v2653_v3 }
 0x51b   : > { %v1100_v45 = vpop.f32.mrf.mxu1 }
 0x51e   : > { %1359 = vmatmul.f32.gmra.mxu1 %v991_v34 }
 0x51f   : > { %1238 = vmatmul.f32.gmra.mxu0 %v2687_v25 }
 0x520   : > { %2152 = vmatmul.msk.f32.gmra.mxu3 %vm632_vm2, %v2779_v6 }
 0x521   : > { %2135 = vmatmul.msk.f32.gmra.mxu2 %vm632_vm2, %v2765_v0 }
 0x523   : > { %v1104_v8 = vpop.f32.mrf.mxu1 }
 0x524   : > { %v923_v31 = vpop.f32.mrf.mxu0 }
 0x525   : > { %v1101_v4 = vadd.f32 %v1100_v45, %v923_v31 }
 0x526   : > { %1365 = vmatmul.f32.gmra.mxu1 %v999_v20 }
 0x527   : > { %1243 = vmatmul.f32.gmra.mxu0 %v2706_v28 }
 0x528   : > { %2153 = vmatmul.msk.f32.gmra.mxu3 %vm632_vm2, %v2791_v11 }
 0x529   : > { %2136 = vmatmul.msk.f32.gmra.mxu2 %vm632_vm2, %v2779_v6 }
 0x52b   : > { %v1108_v3 = vpop.f32.mrf.mxu1 }
 0x52c   : > { %v931_v25 = vpop.f32.mrf.mxu0 }
 0x52d   : > { %v1105_v34 = vadd.f32 %v1104_v8, %v931_v25 }
 0x52e   : > { %1371 = vmatmul.f32.gmra.mxu1 %v1007_v41 }
 0x52f   : > { %1248 = vmatmul.f32.gmra.mxu0 %v2722_v36 }
 0x530   : > { %2154 = vmatmul.msk.f32.gmra.mxu3 %vm632_vm2, %v2801_v19 }
 0x531   : > { %2137 = vmatmul.msk.f32.gmra.mxu2 %vm632_vm2, %v2791_v11 }
 0x533   : > { %v1112_v28 = vpop.f32.mrf.mxu1 }
 0x534   : > { %v939_v20 = vpop.f32.mrf.mxu0 }
 0x535   : > { %v1109_v0 = vadd.f32 %v1108_v3, %v939_v20 }
 0x536   : > { %1377 = vmatmul.f32.gmra.mxu1 %v1015_v61 }
 0x537   : > { %1253 = vmatmul.f32.gmra.mxu0 %v2743_v24 }
 0x538   : > { %2155 = vmatmul.msk.f32.gmra.mxu3 %vm632_vm2, %v2815_v56 }
 0x539   : > { %2138 = vmatmul.msk.f32.gmra.mxu2 %vm632_vm2, %v2801_v19 }
 0x53b   : > { %v1116_v36 = vpop.f32.mrf.mxu1 }
 0x53c   : > { %v947_v41 = vpop.f32.mrf.mxu0 }
 0x53d   : > { %v1113_v6 = vadd.f32 %v1112_v28, %v947_v41 }
 0x53e   : > { %1383 = vmatmul.f32.gmra.mxu1 %v1023_v14 }
 0x53f   : > { %1258 = vmatmul.f32.gmra.mxu0 %v2757_v57 }
 0x540   : > { %2156 = vmatmul.msk.f32.gmra.mxu3 %vm632_vm2, %v2811_v42 }
 0x541   : > { %2139 = vmatmul.msk.f32.gmra.mxu2 %vm632_vm2, %v2815_v56  ;;  %v1097_v56 = vadd.f32 %v1096_v52, %v915_v26 }
 0x543   : > { %v1120_v61 = vpop.f32.mrf.mxu1 }
 0x544   : > { %v955_v24 = vpop.f32.mrf.mxu0 }
 0x545   : > { %v2909_v11 = vadd.f32 %v1116_v36, %v955_v24 }
 0x546   : > { %1389 = vmatmul.f32.gmra.mxu1 %v1031_v60 }
 0x547   : > { %1263 = vmatmul.f32.gmra.mxu0 %v2848_v2 }
 0x548   : > { %2157 = vmatmul.msk.f32.gmra.mxu3 %vm632_vm2, %v2630_v54 }
 0x549   : > { %2140 = vmatmul.msk.f32.gmra.mxu2 %vm632_vm2, %v2811_v42 }
 0x54b   : > { %v1300_v40 = vpop.f32.mrf.mxu1 }
 0x54c   : > { %v963_v57 = vpop.f32.mrf.mxu0 }
 0x54d   : > { %v2916_v19 = vadd.f32 %v1120_v61, %v963_v57 }
 0x54f   : > { %1268 = vmatmul.f32.gmra.mxu0 %v1030_v58 }
 0x550   : > { %2158 = vmatmul.msk.f32.gmra.mxu3 %vm632_vm2, %v2675_v21 }
 0x551   : > { %2141 = vmatmul.msk.f32.gmra.mxu2 %vm632_vm2, %v2630_v54 }
 0x553   : > { %v1306_v7 = vpop.f32.mrf.mxu1 }
 0x554   : > { %v1194_v10 = vpop.f32.mrf.mxu0 }
 0x555   : > { %v1195_v13 = vadd.f32 %v1194_v10, %v1097_v56 }
 0x557   : > { %v1301_v22 = vadd.f32 %v1300_v40, %v1195_v13 }
 0x558   : > { %2159 = vmatmul.msk.f32.gmra.mxu3 %vm632_vm2, %v2671_v17 }
 0x559   : > { %2142 = vmatmul.msk.f32.gmra.mxu2 %vm632_vm2, %v2675_v21 }
 0x55b   : > { %v1312_v54 = vpop.f32.mrf.mxu1 }
 0x55c   : > { %v1199_v42 = vpop.f32.mrf.mxu0 }
 0x55d   : > { %v1200_v12 = vadd.f32 %v1199_v42, %v1101_v4 }
 0x55f   : > { %v1307_v16 = vadd.f32 %v1306_v7, %v1200_v12 }
 0x560   : > { %2160 = vmatmul.msk.f32.gmra.mxu3 %vm632_vm2, %v2697_v29 }
 0x561   : > { %2143 = vmatmul.msk.f32.gmra.mxu2 %vm632_vm2, %v2671_v17 }
 0x563   : > { %v1318_v21 = vpop.f32.mrf.mxu1 }
 0x564   : > { %v1204_v35 = vpop.f32.mrf.mxu0 }
 0x565   : > { %v1205_v46 = vadd.f32 %v1204_v35, %v1105_v34 }
 0x567   : > { %v1313_v47 = vadd.f32 %v1312_v54, %v1205_v46 }
 0x568   : > { %2161 = vmatmul.msk.f32.gmra.mxu3 %vm632_vm2, %v2713_v15 }
 0x569   : > { %2144 = vmatmul.msk.f32.gmra.mxu2 %vm632_vm2, %v2697_v29  ;;  %v2942_v29 = vpop.f32.mrf.mxu3 }
 0x56b   : > { %v1324_v2 = vpop.f32.mrf.mxu1 }
 0x56c   : > { %v1209_v37 = vpop.f32.mrf.mxu0 }
 0x56d   : > { %v1210_v43 = vadd.f32 %v1209_v37, %v1109_v0 }
 0x56f   : > { %v1319_v9 = vadd.f32 %v1318_v21, %v1210_v43 }
 0x570   : > { %2162 = vmatmul.msk.f32.gmra.mxu3 %vm632_vm2, %v2737_v50 }
 0x571   : > { %2145 = vmatmul.msk.f32.gmra.mxu2 %vm632_vm2, %v2713_v15  ;;  %v2948_v15 = vpop.f32.mrf.mxu2 }
 0x573   : > { %v1330_v3 = vpop.f32.mrf.mxu1 }
 0x574   : > { %v1214_v17 = vpop.f32.mrf.mxu0 }
 0x575   : > { %v1215_v39 = vadd.f32 %v1214_v17, %v1113_v6 }
 0x577   : > { %v1325_v14 = vadd.f32 %v1324_v2, %v1215_v39 }
 0x578   : > { %2163 = vmatmul.msk.f32.gmra.mxu3 %vm632_vm2, %v2751_v44 }
 0x579   : > { %2146 = vmatmul.msk.f32.gmra.mxu2 %vm632_vm2, %v2737_v50 }
 0x57b   : > { %v1336_v36 = vpop.f32.mrf.mxu1 }
 0x57c   : > { %v1219_v26 = vpop.f32.mrf.mxu0 }
 0x580   : > { %2164 = vmatmul.msk.f32.gmra.mxu3 %vm632_vm2, %v2842_v5 }
 0x581   : > { %2147 = vmatmul.msk.f32.gmra.mxu2 %vm632_vm2, %v2751_v44 }
 0x583   : > { %v1152_v18 = vpop.f32.mrf.mxu3  ;;  %v1342_v40 = vpop.f32.mrf.mxu1 }
 0x584   : > { %v1224_v34 = vpop.f32.mrf.mxu0 }
 0x588   : > { %2165 = vmatmul.msk.f32.gmra.mxu3 %vm632_vm2, %v2856_v33 }
 0x589   : > { %2148 = vmatmul.msk.f32.gmra.mxu2 %vm632_vm2, %v2842_v5 }
 0x58b   : > { %v1156_v27 = vpop.f32.mrf.mxu3  ;;  %v1348_v7 = vpop.f32.mrf.mxu1 }
 0x58c   : > { %v1027_v23 = vpop.f32.mrf.mxu2  ;;  %v1229_v41 = vpop.f32.mrf.mxu0 }
 0x58d   : > { %v2954_v50 = vadd.f32 %v1152_v18, %v1027_v23  ;;  %v2979_v23 = vld [vmem:[%s377_s26] sm:$0xff] }
 0x58e   : > { %1771 = vrot.lane.b32.xlu2 %v2979_v23, %s2345_s22 }
 0x591   : > { %2149 = vmatmul.msk.f32.gmra.mxu2 %vm632_vm2, %v2856_v33  ;;  %vm1603_vm2 = vcmask 154624  }
 0x593   : > { %v1524_v38 = vpop.f32.mrf.mxu3  ;;  %v1354_v35 = vpop.f32.mrf.mxu1 }
 0x594   : > { %v1035_v58 = vpop.f32.mrf.mxu2  ;;  %v1234_v13 = vpop.f32.mrf.mxu0 }
 0x595   : > { %v2958_v60 = vadd.f32 %v1156_v27, %v1035_v58  ;;  %v1220_v27 = vadd.f32 %v1219_v26, %v2909_v11  ;;  %v1125_v58 = vadd.f32 %v2797_v32, %v2803_v48  ;;  %v1235_v11 = vadd.f32 %v1234_v13, %v2823_v1 }
 0x59b   : > { %v1528_v44 = vpop.f32.mrf.mxu3  ;;  %v1360_v37 = vpop.f32.mrf.mxu1 }
 0x59c   : > { %v1435_v53 = vpop.f32.mrf.mxu2  ;;  %v1239_v12 = vpop.f32.mrf.mxu0 }
 0x59d   : > { %v1436_v55 = vadd.f32 %v1435_v53, %v1301_v22  ;;  %v1240_v26 = vadd.f32 %v1239_v12, %v2827_v30 }
 0x59f   : > { %v1525_v52 = vadd.f32 %v1524_v38, %v1436_v55  ;;  %v2981_v38 = vld [vmem:[%s377_s26 + $0x8] sm:$0xff] }
 0x5a0   : > { %1773 = vrot.lane.b32.xlu2 %v2981_v38, %s2345_s22  ;;  %s2350_s22 = smov 0.0  }
 0x5a1   : > { %v2987_v53 = vsub.f32 %v1525_v52, %v2979_v23 }
 0x5a3   : > { %v1532_v59 = vpop.f32.mrf.mxu3  ;;  %v1366_v39 = vpop.f32.mrf.mxu1  ;;  %v1644_v52 = vmul.f32 %v2987_v53, %v2987_v53 }
 0x5a4   : > { %v1439_v62 = vpop.f32.mrf.mxu2  ;;  %v1244_v46 = vpop.f32.mrf.mxu0 }
 0x5a5   : > { %v1440_v45 = vadd.f32 %v1439_v62, %v1307_v16  ;;  %v1331_v62 = vadd.f32 %v1330_v3, %v1220_v27  ;;  %v1245_v1 = vadd.f32 %v1244_v46, %v2831_v49 }
 0x5a7   : > { %v1529_v5 = vadd.f32 %v1528_v44, %v1440_v45  ;;  %v1225_v44 = vadd.f32 %v1224_v34, %v2916_v19  ;;  %v1149_v19 = vadd.f32 %v2942_v29, %v2948_v15  ;;  %v1349_v15 = vadd.f32 %v1348_v7, %v1235_v11 }
 0x5a8   : > { %1843 = vrot.lane.b32.xlu2 %v2979_v23, %s2346_s10 }
 0x5a9   : > { %v2990_v55 = vsub.f32 %v1529_v5, %v2981_v38  ;;  %v1337_v48 = vadd.f32 %v1336_v36, %v1225_v44 }
 0x5ab   : > { %v1536_v8 = vpop.f32.mrf.mxu3  ;;  %v1645_v5 = vmul.f32 %v2990_v55, %v2990_v55 }
 0x5ac   : > { %v1443_v31 = vpop.f32.mrf.mxu2  ;;  %v1249_v43 = vpop.f32.mrf.mxu0 }
 0x5ad   : > { %v1444_v4 = vadd.f32 %v1443_v31, %v1313_v47  ;;  %v1250_v36 = vadd.f32 %v1249_v43, %v2835_v51  ;;  %v1361_v51 = vadd.f32 %v1360_v37, %v1245_v1 }
 0x5af   : > { %v1533_v25 = vadd.f32 %v1532_v59, %v1444_v4  ;;  %v1372_v59 = vpop.f32.mrf.mxu1  ;;  %v1367_v27 = vadd.f32 %v1366_v39, %v1250_v36 }
 0x5b0   : > { %1872 = vrot.lane.b32.xlu2 %v2981_v38, %s2348_s13 }
 0x5b1   : > { %v2995_v4 = vsub.f32 %v1533_v25, %v2979_v23 }
 0x5b3   : > { %v1540_v33 = vpop.f32.mrf.mxu3 }
 0x5b4   : > { %v1447_v28 = vpop.f32.mrf.mxu2 }
 0x5b5   : > { %v1448_v20 = vadd.f32 %v1447_v28, %v1319_v9  ;;  %v1355_v28 = vadd.f32 %v1354_v35, %v1240_v26 }
 0x5b7   : > { %v1537_v0 = vadd.f32 %v1536_v8, %v1448_v20  ;;  %v1230_v8 = vadd.f32 %v1229_v41, %v1125_v58  ;;  %v1604_v20 = vsel %vm1603_vm2, %v2987_v53, 0.0  ;;  %v1646_v41 = vmul.f32 %v2995_v4, %v2995_v4  ;;  %v1378_v12 = vpop.f32.mrf.mxu1 }
 0x5b8   : > { %1819 = vrot.lane.b32.xlu2 %v2979_v23, %s2351_s1 }
 0x5b9   : > { %v3007_v30 = vsub.f32 %v1537_v0, %v2981_v38  ;;  %v1343_v34 = vadd.f32 %v1342_v40, %v1230_v8  ;;  %v1660_v0 = vsel %vm1603_vm2, %v1644_v52, 0.0 }
 0x5bb   : > { %v1544_v6 = vpop.f32.mrf.mxu3  ;;  %v1647_v13 = vmul.f32 %v3007_v30, %v3007_v30 }
 0x5bc   : > { %v1451_v61 = vpop.f32.mrf.mxu2 }
 0x5bd   : > { %v1452_v24 = vadd.f32 %v1451_v61, %v1325_v14  ;;  %v1254_v14 = vpop.f32.mrf.mxu0  ;;  %v1661_v61 = vsel %vm1603_vm2, %v1645_v5, 0.0 }
 0x5be   : > { %v1662_v46 = vadd.f32 %v1661_v61, %v1660_v0 }
 0x5bf   : > { %v1541_v57 = vadd.f32 %v1540_v33, %v1452_v24  ;;  %v1605_v33 = vsel %vm1603_vm2, %v2990_v55, 0.0  ;;  %v1384_v0 = vpop.f32.mrf.mxu1 }
 0x5c1   : > { %v3019_v24 = vsub.f32 %v1541_v57, %v2979_v23 }
 0x5c3   : > { %v2960_v56 = vpop.f32.mrf.mxu3  ;;  %v1648_v58 = vmul.f32 %v3019_v24, %v3019_v24 }
 0x5c4   : > { %v1455_v10 = vpop.f32.mrf.mxu2 }
 0x5c5   : > { %v1456_v31 = vadd.f32 %v1455_v10, %v1331_v62  ;;  %v1259_v32 = vpop.f32.mrf.mxu0  ;;  %v1606_v10 = vadd.f32 %v1605_v33, %v1604_v20  ;;  %v1667_v5 = vsel %vm1603_vm2, %v1648_v58, 0.0 }
 0x5c6   : > { %v1260_v37 = vadd.f32 %v1259_v32, %v1149_v19 }
 0x5c7   : > { %v1545_v29 = vadd.f32 %v1544_v6, %v1456_v31 }
 0x5c8   : > { %v1379_v1 = vadd.f32 %v1378_v12, %v1260_v37 }
 0x5c9   : > { %v3028_v35 = vsub.f32 %v1545_v29, %v2981_v38 }
 0x5cb   : > { %v2962_v22 = vpop.f32.mrf.mxu3  ;;  %v1649_v39 = vmul.f32 %v3028_v35, %v3028_v35 }
 0x5cc   : > { %v1459_v42 = vpop.f32.mrf.mxu2 }
 0x5cd   : > { %v1460_v25 = vadd.f32 %v1459_v42, %v1337_v48  ;;  %v1607_v42 = vsel %vm1603_vm2, %v2995_v4, 0.0  ;;  %v1264_v62 = vpop.f32.mrf.mxu0 }
 0x5cf   : > { %v1549_v7 = vadd.f32 %v2960_v56, %v1460_v25  ;;  %v1609_v56 = vsel %vm1603_vm2, %v3007_v30, 0.0 }
 0x5d3   : > { %v2964_v16 = vpop.f32.mrf.mxu3 }
 0x5d4   : > { %v1463_v54 = vpop.f32.mrf.mxu2 }
 0x5d5   : > { %v1464_v49 = vadd.f32 %v1463_v54, %v1343_v34  ;;  %v1255_v54 = vadd.f32 %v1254_v14, %v2867_v63  ;;  %v1608_v63 = vadd.f32 %v1607_v42, %v1606_v10  ;;  %v1665_v14 = vsel %vm1603_vm2, %v1647_v13, 0.0  ;;  %v1269_v12 = vpop.f32.mrf.mxu0 }
 0x5d7   : > { %v1553_v43 = vadd.f32 %v2962_v22, %v1464_v49  ;;  %v1373_v31 = vadd.f32 %v1372_v59, %v1255_v54  ;;  %v1610_v32 = vadd.f32 %v1609_v56, %v1608_v63 }
 0x5d9   : > { %v3048_v48 = vsub.f32 %v1553_v43, %v2981_v38 }
 0x5db   : > { %v2966_v47 = vpop.f32.mrf.mxu3  ;;  %v1651_v36 = vmul.f32 %v3048_v48, %v3048_v48 }
 0x5dc   : > { %v1467_v21 = vpop.f32.mrf.mxu2 }
 0x5dd   : > { %v1468_v40 = vadd.f32 %v1467_v21, %v1349_v15  ;;  %v1663_v21 = vsel %vm1603_vm2, %v1646_v41, 0.0  ;;  %v1669_v15 = vsel %vm1603_vm2, %v1649_v39, 0.0  ;;  %v1673_v54 = vsel %vm1603_vm2, %v1651_v36, 0.0 }
 0x5de   : > { %v1664_v22 = vadd.f32 %v1663_v21, %v1662_v46 }
 0x5df   : > { %v1557_v44 = vadd.f32 %v2964_v16, %v1468_v40  ;;  %v1611_v16 = vsel %vm1603_vm2, %v3019_v24, 0.0 }
 0x5e0   : > { %v1666_v52 = vadd.f32 %v1665_v14, %v1664_v22  ;;  %v1612_v29 = vadd.f32 %v1611_v16, %v1610_v32 }
 0x5e3   : > { %v2968_v9 = vpop.f32.mrf.mxu3 }
 0x5e4   : > { %v1471_v17 = vpop.f32.mrf.mxu2 }
 0x5e5   : > { %v1472_v57 = vadd.f32 %v1471_v17, %v1355_v28  ;;  %v3039_v17 = vsub.f32 %v1549_v7, %v2979_v23 }
 0x5e7   : > { %v1561_v11 = vadd.f32 %v2966_v47, %v1472_v57  ;;  %v1613_v47 = vsel %vm1603_vm2, %v3028_v35, 0.0  ;;  %v1650_v59 = vmul.f32 %v3039_v17, %v3039_v17  ;;  %v1615_v20 = vsel %vm1603_vm2, %v3039_v17, 0.0 }
 0x5e8   : > { %v1614_v61 = vadd.f32 %v1613_v47, %v1612_v29 }
 0x5e9   : > { %v3062_v28 = vsub.f32 %v1561_v11, %v2981_v38  ;;  %v1671_v40 = vsel %vm1603_vm2, %v1650_v59, 0.0 }
 0x5eb   : > { %v2976_v18 = vpop.f32.mrf.mxu3  ;;  %v1621_v58 = vsel %vm1603_vm2, %v3062_v28, 0.0 }
 0x5ec   : > { %v2970_v2 = vpop.f32.mrf.mxu2 }
 0x5ed   : > { %v1476_v8 = vadd.f32 %v2970_v2, %v1361_v51  ;;  %v3052_v2 = vsub.f32 %v1557_v44, %v2979_v23  ;;  %v1616_v51 = vadd.f32 %v1615_v20, %v1614_v61 }
 0x5ef   : > { %v1565_v34 = vadd.f32 %v2968_v9, %v1476_v8  ;;  %v1668_v9 = vadd.f32 %v1667_v5, %v1666_v52  ;;  %v1619_v57 = vsel %vm1603_vm2, %v3052_v2, 0.0 }
 0x5f1   : > { %v3075_v10 = vsub.f32 %v1565_v34, %v2979_v23  ;;  %v1670_v7 = vadd.f32 %v1669_v15, %v1668_v9 }
 0x5f3   : > { %v3003_v3 = vpop.f32.mrf.mxu3  ;;  %v1672_v43 = vadd.f32 %v1671_v40, %v1670_v7  ;;  %v1654_v44 = vmul.f32 %v3075_v10, %v3075_v10  ;;  %v1623_v11 = vsel %vm1603_vm2, %v3075_v10, 0.0 }
 0x5f4   : > { %v1479_v45 = vpop.f32.mrf.mxu2 }
 0x5f5   : > { %v1480_v19 = vadd.f32 %v1479_v45, %v1367_v27  ;;  %v1265_v45 = vadd.f32 %v1264_v62, %v2954_v50  ;;  %v1652_v50 = vmul.f32 %v3052_v2, %v3052_v2  ;;  %v1270_v62 = vadd.f32 %v1269_v12, %v2958_v60 }
 0x5f6   : > { %v1674_v8 = vadd.f32 %v1673_v54, %v1672_v43  ;;  %v1679_v52 = vsel %vm1603_vm2, %v1654_v44, 0.0  ;;  %v2344_v44 = vmov 2431.0  }
 0x5f7   : > { %v1569_v41 = vadd.f32 %v2976_v18, %v1480_v19  ;;  %v1653_v18 = vmul.f32 %v3062_v28, %v3062_v28  ;;  %v1385_v42 = vadd.f32 %v1384_v0, %v1265_v45 }
 0x5f9   : > { %v3084_v46 = vsub.f32 %v1569_v41, %v2981_v38  ;;  %v1677_v39 = vsel %vm1603_vm2, %v1653_v18, 0.0 }
 0x5fb   : > { %v1576_v26 = vpop.f32.mrf.mxu3  ;;  %v1625_v60 = vsel %vm1603_vm2, %v3084_v46, 0.0 }
 0x5fc   : > { %v1483_v6 = vpop.f32.mrf.mxu2 }
 0x5fd   : > { %v1484_v33 = vadd.f32 %v1483_v6, %v1373_v31  ;;  %v1617_v6 = vsel %vm1603_vm2, %v3048_v48, 0.0 }
 0x5fe   : > { %v1618_v27 = vadd.f32 %v1617_v6, %v1616_v51 }
 0x5ff   : > { %v1573_v13 = vadd.f32 %v3003_v3, %v1484_v33  ;;  %v1675_v3 = vsel %vm1603_vm2, %v1652_v50, 0.0 }
 0x600   : > { %v1620_v22 = vadd.f32 %v1619_v57, %v1618_v27  ;;  %v1676_v16 = vadd.f32 %v1675_v3, %v1674_v8 }
 0x601   : > { %v3092_v63 = vsub.f32 %v1573_v13, %v2979_v23 }
 0x602   : > { %v1622_v19 = vadd.f32 %v1621_v58, %v1620_v22  ;;  %v1678_v47 = vadd.f32 %v1677_v39, %v1676_v16  ;;  %v2343_v58 = vmov 2432.0  }
 0x603   : > { %v1580_v56 = vpop.f32.mrf.mxu3  ;;  %v1656_v5 = vmul.f32 %v3092_v63, %v3092_v63  ;;  %v1627_v33 = vsel %vm1603_vm2, %v3092_v63, 0.0  ;;  %2269 = vrcp.f32 %v2343_v58 }
 0x604   : > { %v1487_v25 = vpop.f32.mrf.mxu2  ;;  %v1624_v59 = vadd.f32 %v1623_v11, %v1622_v19  ;;  %v1680_v36 = vadd.f32 %v1679_v52, %v1678_v47  ;;  %2271 = vrcp.f32 %v2344_v44 }
 0x605   : > { %v1488_v49 = vadd.f32 %v1487_v25, %v1379_v1  ;;  %v1390_v25 = vpop.f32.mrf.mxu1  ;;  %v1683_v9 = vsel %vm1603_vm2, %v1656_v5, 0.0 }
 0x606   : > { %v1391_v34 = vadd.f32 %v1390_v25, %v1270_v62  ;;  %v1626_v20 = vadd.f32 %v1625_v60, %v1624_v59 }
 0x607   : > { %v1577_v21 = vadd.f32 %v1576_v26, %v1488_v49  ;;  %v1655_v26 = vmul.f32 %v3084_v46, %v3084_v46 }
 0x608   : > { %v1628_v50 = vadd.f32 %v1627_v33, %v1626_v20 }
 0x609   : > { %v3101_v31 = vsub.f32 %v1577_v21, %v2981_v38  ;;  %v1681_v45 = vsel %vm1603_vm2, %v1655_v26, 0.0 }
 0x60a   : > { %v1682_v40 = vadd.f32 %v1681_v45, %v1680_v36 }
 0x60b   : > { %v1657_v29 = vmul.f32 %v3101_v31, %v3101_v31  ;;  %v1629_v49 = vsel %vm1603_vm2, %v3101_v31, 0.0  ;;  %v1584_v61 = vpop.f32.mrf.mxu3 }
 0x60c   : > { %v1491_v37 = vpop.f32.mrf.mxu2  ;;  %v1630_v51 = vadd.f32 %v1629_v49, %v1628_v50  ;;  %v1684_v18 = vadd.f32 %v1683_v9, %v1682_v40 }
 0x60d   : > { %v1492_v14 = vadd.f32 %v1491_v37, %v1385_v42  ;;  %v1685_v7 = vsel %vm1603_vm2, %v1657_v29, 0.0 }
 0x60e   : > { %v1686_v57 = vadd.f32 %v1685_v7, %v1684_v18 }
 0x60f   : > { %v1581_v32 = vadd.f32 %v1580_v56, %v1492_v14  ;;  %v2270_v14 = vpop.eup %2269 }
 0x610   : > { %v2272_v62 = vpop.eup %2271  ;;  %v1701_v8 = vmul.f32 2432.0, %v2270_v14  ;;  %vm1705_vm3 = vweird.f32 %v2270_v14 }
 0x611   : > { %v3109_v1 = vsub.f32 %v1581_v32, %v2979_v23  ;;  %v1714_v22 = vmul.f32 2431.0, %v2272_v62  ;;  %vm1718_vm4 = vweird.f32 %v2272_v62 }
 0x612   : > { %v1702_v26 = vsub.f32 1.0, %v1701_v8  ;;  %v1753_v8 = vld [vmem:[%s3306_s6] sm:$0x1] }
 0x613   : > { %v1658_v0 = vmul.f32 %v3109_v1, %v3109_v1  ;;  %v1631_v13 = vsel %vm1603_vm2, %v3109_v1, 0.0  ;;  %v1715_v16 = vsub.f32 1.0, %v1714_v22 }
 0x614   : > { %v1495_v15 = vpop.f32.mrf.mxu2  ;;  %v1632_v54 = vadd.f32 %v1631_v13, %v1630_v51  ;;  %v1703_v25 = vmul.f32 %v2270_v14, %v1702_v26  ;;  %v3155_v26 = vld [vmem:[%s3307_s7] ss:$0 sm:$0xff] }
 0x615   : > { %v1496_v41 = vadd.f32 %v1495_v15, %v1391_v34  ;;  %v1687_v12 = vsel %vm1603_vm2, %v1658_v0, 0.0  ;;  %v1716_v47 = vmul.f32 %v2272_v62, %v1715_v16 }
 0x616   : > { %v1688_v3 = vadd.f32 %v1687_v12, %v1686_v57  ;;  %v1704_v45 = vadd.f32 %v2270_v14, %v1703_v25 }
 0x617   : > { %v1585_v6 = vadd.f32 %v1584_v61, %v1496_v41  ;;  %v1717_v15 = vadd.f32 %v2272_v62, %v1716_v47 }
 0x618   : > { %v1706_v49 = vsel %vm1705_vm3, %v2270_v14, %v1704_v45  ;;  %vm1816_vm3 = vcmask 728624  }
 0x619   : > { %v3125_v42 = vsub.f32 %v1585_v6, %v2981_v38  ;;  %v1719_v0 = vsel %vm1718_vm4, %v2272_v62, %v1717_v15  ;;  %vm1825_vm4 = vcmask 859848  }
 0x61b   : > { %v1633_v21 = vsel %vm1603_vm2, %v3125_v42, 0.0  ;;  %v1659_v43 = vmul.f32 %v3125_v42, %v3125_v42 }
 0x61c   : > { %v1634_v27 = vadd.f32 %v1633_v21, %v1632_v54 }
 0x61d   : > { %v1689_v56 = vsel %vm1603_vm2, %v1659_v43, 0.0 }
 0x61e   : > { %1635 = vadd.xlane.f32.xlu0 %v1634_v27  ;;  %v1690_v37 = vadd.f32 %v1689_v56, %v1688_v3 }
 0x620   : > { %1691 = vadd.xlane.f32.xlu1 %v1690_v37 }
 0x632   : > { %1845 = vrot.lane.b32.xlu0 %v2981_v38, %s2346_s10 }
 0x639   : > { %1797 = vrot.lane.b32.xlu1 %v2981_v38, %s2347_s12 }
 0x63a   : > { %1870 = vrot.lane.b32.xlu0 %v2979_v23, %s2348_s13  ;;  %s2360_s13 = smov 117  }
 0x641   : > { %1896 = vrot.lane.b32.xlu1 %v2981_v38, %s2349_s18 }
 0x642   : > { %1795 = vrot.lane.b32.xlu0 %v2979_v23, %s2347_s12  ;;  %s2352_s12 = smov 101  }
 0x643   : > { %1918 = vrot.lane.b32.xlu2 %v2979_v23, %s2352_s12 }
 0x64a   : > { %1894 = vrot.lane.b32.xlu0 %v2979_v23, %s2349_s18  ;;  %s2202_s18 = smul.u32 48, %s2429_s9 }
 0x652   : > { %1821 = vrot.lane.b32.xlu0 %v2981_v38, %s2351_s1 }
 0x65a   : > { %1920 = vrot.lane.b32.xlu0 %v2981_v38, %s2352_s12  ;;  %s2357_s12 = smov 35  }
 0x691   : > { %v1636_v39 = vpop.xlane.xlu0 %1635 }
 0x692   : > { %v1637_v11 = vrot.slane %v1636_v39, 4 }
 0x693   : > { %v1692_v32 = vpop.xlane.xlu1 %1691 }
 0x694   : > { %v1638_v19 = vadd.f32 %v1637_v11, %v1636_v39  ;;  %v1693_v52 = vrot.slane %v1692_v32, 4 }
 0x696   : > { %v1639_v60 = vrot.slane %v1638_v19, 2  ;;  %v1694_v5 = vadd.f32 %v1693_v52, %v1692_v32 }
 0x698   : > { %v1695_v59 = vrot.slane %v1694_v5, 2  ;;  %v1640_v34 = vadd.f32 %v1639_v60, %v1638_v19 }
 0x69a   : > { %v1641_v33 = vrot.slane %v1640_v34, 1  ;;  %v1696_v29 = vadd.f32 %v1695_v59, %v1694_v5 }
 0x69c   : > { %v1642_v20 = vadd.f32 %v1641_v33, %v1640_v34  ;;  %v1697_v36 = vrot.slane %v1696_v29, 1 }
 0x69e   : > { %2190 = vpush %v1642_v20  ;;  %v1698_v41 = vadd.f32 %v1697_v36, %v1696_v29 }
 0x6a0   : > { %2192 = vpush %v1698_v41 }
 0x6a1   : > { %2194 = vpush %v1706_v49 }
 0x6a2   : > { %2196 = vpush %v1719_v0 }
 0x6a4   : > { %v3203_v20 = vpop.permute.xlu0 %1845 }
 0x6cf   : > { %s2191_s19 = spop %2190 }
 0x6d1   : > { %s2193_s20 = spop %2192 }
 0x6d2   : > { %s2195_s21 = spop %2194 }
 0x6d3   : > { %s1708_s23 = smul.f32 %s2195_s21, %s2191_s19  ;;  %s2197_s26 = spop %2196 }
 0x6d4   : > { %s1966_s21 = scalar_lea.hbm %s3308_s8, %s2202_s18 }
 0x6d5   : > { %s1709_s24 = smul.f32 2432.0, %s1708_s23 }
 0x6d7   : > { %s1710_s17 = smul.f32 %s1709_s24, %s1708_s23  ;;  %s365_s23 = sand.u32 1, %s2331_s28  }
 0x6d8   : > { %s2189_s24 = smul.u32 48, %s365_s23 }
 0x6d9   : > { %s1711_s25 = ssub.f32 %s2193_s20, %s1710_s17  ;;  %s2353_s17 = smov 47  }
 0x6db   : > { %s1712_s0 = smax.f32 %s2350_s22, %s1711_s25  ;;  %s2354_s25 = smov 12  }
 0x6dc   : > { %s1721_s10 = smul.f32 %s2197_s26, %s1712_s0  ;;  %s3182_s26 = scalar_lea.vmem [#allocation2], %s2189_s24 }
 0x6dd   : > { %s2355_s22 = smov 105   ;;  %1854 = vst.msk [vmem:[%s3182_s26 + $0x20] sm:$0xff] %vm1851_vm12, %v3203_v20  ;;  %s1967_s24 = sshll.u32 %s3182_s26, 4  ;;  %s1968_s24 = int_to_ptr.vmem [resolvable:$true] %s1967_s24 }
 0x6de   : > { %v1722_v9 = vstv %s1721_s10  ;;  %s2356_s10 = smov 70  }
 0x6df   : > { %2273 = vrsqrt.f32 %v1722_v9  ;;  %vm1730_vm5 = vcmp.eq.f32.partialorder %v1722_v9, inf  ;;  %v1733_v18 = vand.u32 2147483648, %v1722_v9  ;;  %vm1732_vm6 = vcmp.eq.f32.partialorder %v1722_v9, 0.0 }
 0x6e5   : > { %v2274_v61 = vpop.eup %2273 }
 0x6e6   : > { %v1724_v50 = vmul.f32 %v2274_v61, %v1722_v9 }
 0x6e8   : > { %v1725_v40 = vmul.f32 %v2274_v61, %v1724_v50 }
 0x6ea   : > { %v1726_v6 = vmul.f32 0.5, %v1725_v40  ;;  %v1871_v40 = vpop.permute.xlu0 %1870 }
 0x6ec   : > { %v1727_v13 = vsub.f32 1.5, %v1726_v6 }
 0x6ee   : > { %v1728_v7 = vmul.f32 %v2274_v61, %v1727_v13 }
 0x6f0   : > { %v1729_v51 = vmul.f32 %v1728_v7, %v1722_v9 }
 0x6f2   : > { %v1731_v12 = vsel %vm1730_vm5, %v1722_v9, %v1729_v51  ;;  %v1796_v13 = vpop.permute.xlu0 %1795  ;;  %vm1840_vm5 = vcmask 1015624  }
 0x6f3   : > { %v1734_v54 = vsel %vm1732_vm6, %v1733_v18, %v1731_v12  ;;  %vm1849_vm6 = vcmask 1048544  }
 0x6f4   : > { %2198 = vpush %v1734_v54 }
 0x6fa   : > { %v1895_v7 = vpop.permute.xlu0 %1894 }
 0x702   : > { %v1822_v51 = vpop.permute.xlu0 %1821 }
 0x70a   : > { %v1921_v54 = vpop.permute.xlu0 %1920 }
 0x725   : > { %s2199_s0 = spop %2198 }
 0x726   : > { %s1736_s1 = sadd.f32 1e-05, %s2199_s0  ;;  %s2358_s0 = smov 82  }
 0x728   : > { %v1737_v57 = vstv %s1736_s1  ;;  %s2359_s1 = smov 8  }
 0x729   : > { %2275 = vrcp.f32 %v1737_v57  ;;  %v1749_v3 = vand.u32 2147483648, %v1737_v57  ;;  %v1747_v37 = vand.u32 2147483647, %v1737_v57  ;;  %vm1743_vm8 = vweird.f32 %v1737_v57 }
 0x72b   : > { %v1750_v44 = vor.u32 1.1754944e-38, %v1749_v3  ;;  %vm1748_vm10 = vcmp.eq.f32.partialorder %v1747_v37, 8.507059e+37 }
 0x72f   : > { %v2276_v21 = vpop.eup %2275 }
 0x730   : > { %v1739_v43 = vmul.f32 %v2276_v21, %v1737_v57  ;;  %vm1744_vm7 = vweird.f32 %v2276_v21 }
 0x731   : > { %vm1745_vm9 = vmor %vm1743_vm8, %vm1744_vm7  ;;  %vm1915_vm7 = vcmask 827024   ;;  %vm1924_vm8 = vcmask 958248  }
 0x732   : > { %v1740_v27 = vsub.f32 1.0, %v1739_v43 }
 0x734   : > { %v1741_v56 = vmul.f32 %v2276_v21, %v1740_v27 }
 0x736   : > { %v1742_v58 = vadd.f32 %v2276_v21, %v1741_v56 }
 0x738   : > { %v1746_v14 = vsel %vm1745_vm9, %v2276_v21, %v1742_v58  ;;  %vm1939_vm9 = vcmask 1048488  }
 0x739   : > { %v1751_v62 = vsel %vm1748_vm10, %v1750_v44, %v1746_v14  ;;  %vm1941_vm10 = vcmask 64512  }
 0x73a   : > { %2200 = vpush %v1751_v62 }
 0x76b   : > { %s2201_s19 = spop %2200 }
 0x76c   : > { %v1754_v22 = vstv %s2201_s19 }
 0x76d   : > { %v1755_v39 = vmul.f32 %v1754_v22, %v1753_v8 }
 0x76f   : > { %v3150_v11 = vperm.slane %v1755_v39, 0 }
 0x771   : > { %v1880_v32 = vmul.f32 %v3150_v11, %v3084_v46  ;;  %v1856_v16 = vmul.f32 %v3150_v11, %v3062_v28  ;;  %v1855_v19 = vmul.f32 %v3150_v11, %v3052_v2  ;;  %v1763_v28 = vmul.f32 %v3150_v11, %v2987_v53 }
 0x772   : > { %v1828_v2 = vmul.f32 %v3150_v11, %v3039_v17  ;;  %v1804_v46 = vmul.f32 %v3150_v11, %v3019_v24  ;;  %v1764_v25 = vmul.f32 %v3150_v11, %v2990_v55  ;;  %v1780_v47 = vmul.f32 %v3150_v11, %v2995_v4  ;;  %v1772_v4 = vpop.permute.xlu2 %1771 }
 0x773   : > { %v1882_v52 = vadd.f32 %v3155_v26, %v1880_v32  ;;  %v1858_v60 = vadd.f32 %v3155_v26, %v1856_v16  ;;  %v1857_v5 = vadd.f32 %v3155_v26, %v1855_v19  ;;  %v1765_v59 = vadd.f32 %v3155_v26, %v1763_v28 }
 0x774   : > { %v1766_v34 = vadd.f32 %v3155_v26, %v1764_v25  ;;  %v1830_v53 = vadd.f32 %v3155_v26, %v1828_v2  ;;  %v1806_v24 = vadd.f32 %v3155_v26, %v1804_v46  ;;  %v1782_v55 = vadd.f32 %v3155_v26, %v1780_v47 }
 0x775   : > { %1887 = vrot.lane.b32.xlu0 %v1882_v52, %s2353_s17  ;;  %1863 = vrot.lane.b32.xlu1 %v1858_v60, %s2354_s25  ;;  %1767 = vst.msk [vmem:[%s3182_s26] sm:$0xff] %vm1603_vm2, %v1765_v59  ;;  %v1903_v17 = vmul.f32 %v3150_v11, %v3092_v63  ;;  %v1781_v33 = vmul.f32 %v3150_v11, %v3007_v30 }
 0x776   : > { %1861 = vrot.lane.b32.xlu2 %v1857_v5, %s2354_s25  ;;  %1768 = vst.msk [vmem:[%s3182_s26 + $0x18] sm:$0xff] %vm1603_vm2, %v1766_v34  ;;  %v1829_v63 = vmul.f32 %v3150_v11, %v3048_v48  ;;  %v1879_v30 = vmul.f32 %v3150_v11, %v3075_v10  ;;  %v1927_v48 = vmul.f32 %v3150_v11, %v3109_v1  ;;  %vm1900_vm2 = vcmask 671248   ;;  %s1955_s25 = scalar_lea.sflag [#allocation3], %s365_s23 }
 0x777   : > { %1778 = vst.msk [vmem:[%s3182_s26] sm:$0xff] %vm1777_vm11, %v1772_v4  ;;  %v1905_v29 = vadd.f32 %v3155_v26, %v1903_v17  ;;  %v1783_v45 = vadd.f32 %v3155_v26, %v1781_v33  ;;  %v1805_v49 = vmul.f32 %v3150_v11, %v3028_v35  ;;  %v1904_v9 = vmul.f32 %v3150_v11, %v3101_v31 }
 0x778   : > { %v1831_v36 = vadd.f32 %v3155_v26, %v1829_v63  ;;  %v1881_v41 = vadd.f32 %v3155_v26, %v1879_v30  ;;  %v1929_v0 = vadd.f32 %v3155_v26, %v1927_v48  ;;  %v1928_v35 = vmul.f32 %v3150_v11, %v3125_v42  ;;  %v1798_v42 = vpop.permute.xlu1 %1797 }
 0x779   : > { %v1807_v10 = vadd.f32 %v3155_v26, %v1805_v49  ;;  %v1906_v61 = vadd.f32 %v3155_v26, %v1904_v9 }
 0x77a   : > { %v1774_v15 = vpop.permute.xlu2 %1773  ;;  %v1930_v1 = vadd.f32 %v3155_v26, %v1928_v35 }
 0x77b   : > { %1779 = vst.msk [vmem:[%s3182_s26 + $0x18] sm:$0xff] %vm1777_vm11, %v1774_v15  ;;  %vm1951_vm11 = vcmask 195648  }
 0x77d   : > { %1834 = vrot.lane.b32.xlu0 %v1830_v53, %s2355_s22  ;;  %1810 = vrot.lane.b32.xlu1 %v1806_v24, %s2356_s10 }
 0x77e   : > { %1786 = vrot.lane.b32.xlu2 %v1782_v55, %s2357_s12 }
 0x780   : > { %v1897_v12 = vpop.permute.xlu1 %1896 }
 0x785   : > { %1909 = vrot.lane.b32.xlu1 %v1905_v29, %s2358_s0  ;;  %1945 = vrot.lane.b32.xlu0 %v2979_v23, %s2359_s1  ;;  %v1844_v23 = vpop.permute.xlu2 %1843 }
 0x786   : > { %1788 = vrot.lane.b32.xlu2 %v1783_v45, %s2357_s12  ;;  %1852 = vst.msk [vmem:[%s3182_s26 + $0x8] sm:$0xff] %vm1851_vm12, %v1844_v23 }
 0x78d   : > { %1836 = vrot.lane.b32.xlu1 %v1831_v36, %s2355_s22  ;;  %v1873_v50 = vpop.permute.xlu2 %1872 }
 0x78e   : > { %1885 = vrot.lane.b32.xlu2 %v1881_v41, %s2353_s17  ;;  %s1969_s17 = sshll.u32 %s1966_s21, 4  ;;  %s1970_s17 = int_to_ptr.hbm [resolvable:$true] %s1969_s17 }
 0x78f   : > { %s2291_s9 = sshra.s32 %s1970_s17, 4  ;;  %s2292_s9 = int_to_ptr.hbm [resolvable:$true] %s2291_s9 }
 0x790   : > { %s2293_s22 = scalar_lea.hbm %s2292_s9, 48  ;;  %p2298_p0 = scmp.lt.s32.totalorder %s2292_s9, %s3308_s8 }
 0x791   : > { %p2294_p11 = scmp.ne.s32.totalorder %s2292_s9, %s2293_s22 }
 0x793   : > { %p2295_p12 = pnand %p2294_p11, %p2446_p5 }
 0x795   : > { %1933 = vrot.lane.b32.xlu1 %v1929_v0, %s2360_s13  ;;  %v1820_v6 = vpop.permute.xlu2 %1819  ;;  %p2296_p13 = pneg %p2295_p12 }
 0x796   : > { %1812 = vrot.lane.b32.xlu2 %v1807_v10, %s2356_s10 }
 0x79d   : > { %1947 = vrot.lane.b32.xlu1 %v2981_v38, %s2359_s1  ;;  %v1919_v31 = vpop.permute.xlu2 %1918 }
 0x79e   : > { %1911 = vrot.lane.b32.xlu2 %v1906_v61, %s2358_s0  ;;  %s2297_s0 = scalar_lea.hbm %s3308_s8, 192 }
 0x79f   : > { %p2299_p1 = scmp.lt.s32.totalorder %s2297_s0, %s2293_s22 }
 0x7a1   : > { %p2300_p2 = por %p2299_p1, %p2298_p0 }
 0x7a3   : > { %p2301_p3 = pnand %p2300_p2, %p2296_p13 }
 0x7a6   : > { %1935 = vrot.lane.b32.xlu2 %v1930_v1, %s2360_s13 }
 0x7d0   : > { %v1862_v38 = vpop.permute.xlu2 %1861 }
 0x7d1   : > { %1868 = vst.msk [vmem:[%s3182_s26 + $0x8] sm:$0xff] %vm1867_vm13, %v1862_v38 }
 0x7d2   : > { %1877 = vst.msk [vmem:[%s3182_s26 + $0x8] sm:$0xff] %vm1876_vm14, %v1871_v40 }
 0x7d8   : > { %v1787_v18 = vpop.permute.xlu2 %1786 }
 0x7d9   : > { %1793 = vst.msk [vmem:[%s3182_s26] sm:$0xff] %vm1792_vm15, %v1787_v18 }
 0x7da   : > { %1802 = vst.msk [vmem:[%s3182_s26] sm:$0xff] %vm1801_vm0, %v1796_v13 }
 0x7e0   : > { %v1789_v57 = vpop.permute.xlu2 %1788 }
 0x7e1   : > { %1794 = vst.msk [vmem:[%s3182_s26 + $0x18] sm:$0xff] %vm1792_vm15, %v1789_v57 }
 0x7e2   : > { %1803 = vst.msk [vmem:[%s3182_s26 + $0x18] sm:$0xff] %vm1801_vm0, %v1798_v42 }
 0x7e7   : > { %v1864_v21 = vpop.permute.xlu1 %1863  ;;  %v1888_v27 = vpop.permute.xlu0 %1887 }
 0x7e8   : > { %1869 = vst.msk [vmem:[%s3182_s26 + $0x20] sm:$0xff] %vm1867_vm13, %v1864_v21  ;;  %v1886_v43 = vpop.permute.xlu2 %1885 }
 0x7e9   : > { %1892 = vst.msk [vmem:[%s3182_s26 + $0x8] sm:$0xff] %vm1891_vm1, %v1886_v43 }
 0x7ea   : > { %1878 = vst.msk [vmem:[%s3182_s26 + $0x20] sm:$0xff] %vm1876_vm14, %v1873_v50 }
 0x7eb   : > { %1893 = vst.msk [vmem:[%s3182_s26 + $0x20] sm:$0xff] %vm1891_vm1, %v1888_v27 }
 0x7ec   : > { %1901 = vst.msk [vmem:[%s3182_s26 + $0x8] sm:$0xff] %vm1900_vm2, %v1895_v7 }
 0x7ed   : > { %1902 = vst.msk [vmem:[%s3182_s26 + $0x20] sm:$0xff] %vm1900_vm2, %v1897_v12 }
 0x7ef   : > { %v1811_v3 = vpop.permute.xlu1 %1810  ;;  %v1835_v37 = vpop.permute.xlu0 %1834 }
 0x7f0   : > { %1817 = vst.msk [vmem:[%s3182_s26] sm:$0xff] %vm1816_vm3, %v1811_v3  ;;  %v1813_v56 = vpop.permute.xlu2 %1812 }
 0x7f1   : > { %1818 = vst.msk [vmem:[%s3182_s26 + $0x18] sm:$0xff] %vm1816_vm3, %v1813_v56 }
 0x7f2   : > { %1826 = vst.msk [vmem:[%s3182_s26] sm:$0xff] %vm1825_vm4, %v1820_v6 }
 0x7f3   : > { %1841 = vst.msk [vmem:[%s3182_s26] sm:$0xff] %vm1840_vm5, %v1835_v37 }
 0x7f4   : > { %1850 = vst.msk [vmem:[%s3182_s26] sm:$0xff] %vm1849_vm6, %v1844_v23 }
 0x7f5   : > { %1827 = vst.msk [vmem:[%s3182_s26 + $0x18] sm:$0xff] %vm1825_vm4, %v1822_v51 }
 0x7f7   : > { %v1910_v58 = vpop.permute.xlu1 %1909  ;;  %v1946_v22 = vpop.permute.xlu0 %1945 }
 0x7f8   : > { %1916 = vst.msk [vmem:[%s3182_s26 + $0x8] sm:$0xff] %vm1915_vm7, %v1910_v58  ;;  %v1912_v44 = vpop.permute.xlu2 %1911 }
 0x7f9   : > { %1917 = vst.msk [vmem:[%s3182_s26 + $0x20] sm:$0xff] %vm1915_vm7, %v1912_v44 }
 0x7fa   : > { %1926 = vst.msk [vmem:[%s3182_s26 + $0x20] sm:$0xff] %vm1924_vm8, %v1921_v54 }
 0x7fb   : > { %1925 = vst.msk [vmem:[%s3182_s26 + $0x8] sm:$0xff] %vm1924_vm8, %v1919_v31 }
 0x7ff   : > { %v1837_v14 = vpop.permute.xlu1 %1836 }
 0x800   : > { %1842 = vst.msk [vmem:[%s3182_s26 + $0x18] sm:$0xff] %vm1840_vm5, %v1837_v14  ;;  %v1936_v62 = vpop.permute.xlu2 %1935 }
 0x801   : > { %1853 = vst.msk [vmem:[%s3182_s26 + $0x18] sm:$0xff] %vm1849_vm6, %v3203_v20 }
 0x802   : > { %1943 = vst.msk [vmem:[%s3182_s26 + $0x20] sm:$0xff] %vm1939_vm9, %v1936_v62 }
 0x803   : > { %1944 = vst.msk [vmem:[%s3182_s26 + $0x28] sm:$0xff] %vm1941_vm10, %v1936_v62 }
 0x807   : > { %v1934_v8 = vpop.permute.xlu1 %1933 }
 0x808   : > { %1940 = vst.msk [vmem:[%s3182_s26 + $0x8] sm:$0xff] %vm1939_vm9, %v1934_v8 }
 0x809   : > { %1942 = vst.msk [vmem:[%s3182_s26 + $0x10] sm:$0xff] %vm1941_vm10, %v1934_v8 }
 0x80a   : > { %1952 = vst.msk [vmem:[%s3182_s26 + $0x10] sm:$0xff] %vm1951_vm11, %v1946_v22 }
 0x80f   : > { %v1948_v39 = vpop.permute.xlu1 %1947 }
 0x810   : > { %1953 = vst.msk [vmem:[%s3182_s26 + $0x28] sm:$0xff] %vm1951_vm11, %v1948_v39 }
 0x811   : > { %2304 = shalt.err (!%p2301_p3)
}
 0x812   : > { %s2361_s23 = smov 384   ;;  %s2362_s26 = smov 24  }
 0x813   : > { %2203 = dma.vmem_to_hbm [thread:$0]  (%p2446_p5), %s1968_s24, 768, %s1970_s17, %s1955_s25, %s2361_s23, %s2361_s23, %s2362_s26  }
 0x814 PF: > { %p2209_p4 = scmp.ge.s32.totalorder %s2339_s30, 2  ;;  %s1984_s18 = sand.u32 1, %s2327_s27  }
 0x815   : > { %s1985_s19 = scalar_lea.sflag [#allocation3], %s1984_s18 }
 0x816   : > { %p2206_p7 = pnand %p2209_p4, %p2450_p6 }
 0x818   : > { %p2207_p8 = pneg %p2206_p7 }
 0x81a   : > { %2322 = dma.done.wait (%p2207_p8), %s1985_s19, 768  }
 0x81b   : > { %2324 = vsyncadd (%p2207_p8), %s1985_s19, 4294966528  ;;  %p18_p9 = scmp.ge.s32.totalorder %s2433_s11, 6   ;;  %s3315_s27 = smov %s2331_s28 }
 0x81c   : > { %s3316_s28 = smov %s2335_s29  ;;  %s3317_s29 = smov %s2444_s14 }
 0x81d   : > { %s3318_s30 = smov %s2433_s11  ;;  %20 = sbr.rel (!%p18_p9) target bundleno = 6 (0x6), region = 102 }
 0x822   :  { %1991 = vsyncpa [#allocation3], 1 }
 0x823   :  { %1993 = vsyncpa [#allocation3 + $0x1], 1 }

</bundles_post_ra>
